<compile_context>
chip_gen: v7x
topology: tpu7x:2x2x1
jax: 0.10.0
libtpu: 0.0.40
codegen_flags: <defaults>
</compile_context>

<pallas_src>
import functools

import jax
import jax.numpy as jnp
from jax import lax
from jax.experimental import pallas as pl
from jax.experimental.pallas import tpu as pltpu


def _resblock_kernel(H, W, x_ref, w1_ref, w2_ref, p_ref, edge_ref, out_ref):
    C, NHW = x_ref.shape

    x = x_ref[...]                                   # (C, B*H*W) f32
    p = p_ref[...]                                   # (C, 3): [t1 | alpha | t2]
    t1, alpha, t2 = p[:, 0:1], p[:, 1:2], p[:, 2:3]  # (C, 1) sublane vectors

    # Border-validity masks, decoded once from bit-packed edge codes
    # (bit0: row>=1, bit1: row<=H-2, bit2: col>=1, bit3: col<=W-2).
    edge = edge_ref[...]                             # (1, NHW) int32
    ok = [(edge & (1 << b)) != 0 for b in range(4)]  # up, down, left, right
    tap_mask = []
    for t in range(9):
        dy, dx = t // 3 - 1, t % 3 - 1
        m = None
        for cond, mk in ((dy == -1, ok[0]), (dy == 1, ok[1]),
                         (dx == -1, ok[2]), (dx == 1, ok[3])):
            if cond:
                m = mk if m is None else (m & mk)
        tap_mask.append(m)                           # None for the center tap

    def conv3x3(v, w_ref, shift_bias):
        # 3x3 "same" conv: lane rotations + masked selects + (C,C)x(C,NHW)
        # MXU dots.  Cross-row / cross-image wraps of the rotation only land
        # on positions the border mask zeroes, so no padding is needed.
        acc = jnp.dot(w_ref[4], v, preferred_element_type=jnp.float32)  # center
        for t in range(9):
            if t == 4:
                continue
            dy, dx = t // 3 - 1, t % 3 - 1
            s = dy * W + dx                                   # source offset
            vs = pltpu.roll(v, shift=(-s) % NHW, axis=1)      # vs[:,p] = v[:,p+s]
            vs = jnp.where(tap_mask[t], vs, 0.0)
            acc = acc + jnp.dot(w_ref[t], vs,
                                preferred_element_type=jnp.float32)
        return acc + shift_bias

    # conv1 (BN1 scale folded into w1) + shift, then PReLU.
    y1 = conv3x3(x, w1_ref, t1)
    h = jnp.where(y1 > 0, y1, alpha * y1)
    # conv2 (BN2 scale folded into w2) + shift; Dropout2d == identity in eval.
    y2 = conv3x3(h, w2_ref, t2)

    # Residual add; lane-dense store.
    out_ref[...] = (x + y2).astype(out_ref.dtype)


def residual_block_forward(x_nchw, params, eps=0.8):
    B, C, H, W = x_nchw.shape
    NHW = B * H * W

    # Channels on sublanes, batch*spatial on lanes (lane-dense).
    x = jnp.transpose(x_nchw, (1, 0, 2, 3)).reshape(C, NHW).astype(jnp.float32)

    # Fold conv bias + BatchNorm(eps, running stats) into per-output-channel
    # weight scales and per-channel shifts.
    s1 = params["gamma1"] / jnp.sqrt(params["var1"] + eps)
    s2 = params["gamma2"] / jnp.sqrt(params["var2"] + eps)
    # PyTorch conv weight (Cout, Cin, 3, 3) -> (9, Cout, Cin), tap = kh*3 + kw.
    w1 = jnp.transpose(params["w1"] * s1[:, None, None, None],
                       (2, 3, 0, 1)).reshape(9, C, C).astype(jnp.float32)
    w2 = jnp.transpose(params["w2"] * s2[:, None, None, None],
                       (2, 3, 0, 1)).reshape(9, C, C).astype(jnp.float32)
    t1 = (params["b1"] - params["mean1"]) * s1 + params["beta1"]
    t2 = (params["b2"] - params["mean2"]) * s2 + params["beta2"]
    alpha = jnp.broadcast_to(params["alpha"], (C,))       # nn.PReLU single param
    pmat = jnp.stack([t1, alpha, t2], axis=1).astype(jnp.float32)   # (C, 3)

    # Bit-packed border validity per flat lane position (repeats per image).
    row = jnp.arange(H, dtype=jnp.int32)[:, None]
    col = jnp.arange(W, dtype=jnp.int32)[None, :]
    edge_hw = ((row >= 1).astype(jnp.int32)
               + (row <= H - 2).astype(jnp.int32) * 2
               + (col >= 1).astype(jnp.int32) * 4
               + (col <= W - 2).astype(jnp.int32) * 8)              # (H, W)
    edge = jnp.tile(edge_hw.reshape(-1), (B,)).reshape(1, NHW)

    kernel = functools.partial(_resblock_kernel, H, W)

    out = pl.pallas_call(
        kernel,
        out_shape=jax.ShapeDtypeStruct((C, NHW), jnp.float32),
        grid_spec=pltpu.PrefetchScalarGridSpec(
            num_scalar_prefetch=0,
            grid=(1,),                         # single step: B folded into lanes
            in_specs=[
                pl.BlockSpec((C, NHW), lambda i: (0, 0)),       # activations
                pl.BlockSpec((9, C, C), lambda i: (0, 0, 0)),   # w1 (BN folded)
                pl.BlockSpec((9, C, C), lambda i: (0, 0, 0)),   # w2 (BN folded)
                pl.BlockSpec((C, 3), lambda i: (0, 0)),         # [t1|alpha|t2]
                pl.BlockSpec((1, NHW), lambda i: (0, 0)),       # edge codes
            ],
            out_specs=pl.BlockSpec((C, NHW), lambda i: (0, 0)),
        ),
        compiler_params=pltpu.CompilerParams(
            dimension_semantics=("arbitrary",)),
    )(x, w1, w2, pmat, edge)

    return jnp.transpose(out.reshape(C, B, H, W), (1, 0, 2, 3))     # back to NCHW


def residual_block_ref(x, p, eps=0.8):
    """Plain-JAX reference matching PyTorch eval() forward."""
    def conv(z, w, b):
        y = lax.conv_general_dilated(
            z, w, window_strides=(1, 1), padding=((1, 1), (1, 1)),
            dimension_numbers=("NCHW", "OIHW", "NCHW"))
        return y + b[None, :, None, None]

    def bn(z, g, be, m, v):
        return (z - m[None, :, None, None]) / jnp.sqrt(v[None, :, None, None] + eps) \
            * g[None, :, None, None] + be[None, :, None, None]

    h = bn(conv(x, p["w1"], p["b1"]), p["gamma1"], p["beta1"], p["mean1"], p["var1"])
    h = jnp.where(h > 0, h, p["alpha"] * h)
    h = bn(conv(h, p["w2"], p["b2"]), p["gamma2"], p["beta2"], p["mean2"], p["var2"])
    return x + h


def make_params(key, C):
    ks = jax.random.split(key, 10)
    return {
        "w1": 0.1 * jax.random.normal(ks[0], (C, C, 3, 3), jnp.float32),
        "b1": 0.1 * jax.random.normal(ks[1], (C,), jnp.float32),
        "gamma1": 1.0 + 0.1 * jax.random.normal(ks[2], (C,), jnp.float32),
        "beta1": 0.1 * jax.random.normal(ks[3], (C,), jnp.float32),
        "mean1": 0.1 * jax.random.normal(ks[4], (C,), jnp.float32),
        "var1": 1.0 + jnp.abs(0.1 * jax.random.normal(ks[5], (C,), jnp.float32)),
        "alpha": jnp.float32(0.25),          # nn.PReLU() default
        "w2": 0.1 * jax.random.normal(ks[6], (C, C, 3, 3), jnp.float32),
        "b2": 0.1 * jax.random.normal(ks[7], (C,), jnp.float32),
        "gamma2": 1.0 + 0.1 * jax.random.normal(ks[8], (C,), jnp.float32),
        "beta2": 0.1 * jax.random.normal(ks[9], (C,), jnp.float32),
        "mean2": 0.05 * jnp.ones((C,), jnp.float32),
        "var2": 1.2 * jnp.ones((C,), jnp.float32),
    }


if __name__ == "__main__":
    key = jax.random.PRNGKey(0)
    kx, kp = jax.random.split(key)

    B, C, H, W = 2, 4, 16, 16                 # NCHW, as in PyTorch
    x = jax.random.normal(kx, (B, C, H, W), jnp.float32)
    params = make_params(kp, C)

    out = jax.block_until_ready(residual_block_forward(x, params))
    ref = jax.block_until_ready(residual_block_ref(x, params))

    assert out.shape == (B, C, H, W)
    assert jnp.allclose(out, ref, atol=1e-4, rtol=1e-4), float(jnp.max(jnp.abs(out - ref)))
    print("KERNEL_OK")
</pallas_src>

<mosaic_0001>
module attributes {stable_mosaic.version = 11 : i64} {
  func.func @_resblock_kernel(%arg0: i32, %arg1: memref<4x512xf32, #tpu.memory_space<vmem>>, %arg2: memref<9x4x4xf32, #tpu.memory_space<vmem>>, %arg3: memref<9x4x4xf32, #tpu.memory_space<vmem>>, %arg4: memref<4x3xf32, #tpu.memory_space<vmem>>, %arg5: memref<1x512xi32, #tpu.memory_space<vmem>>, %arg6: memref<4x512xf32, #tpu.memory_space<vmem>>) attributes {dimension_semantics = [#tpu.dimension_semantics<arbitrary>], iteration_bounds = array<i64: 1>, scalar_prefetch = 0 : i64, scratch_operands = 0 : i64, tpu.core_type = #tpu.core_type<tc>, window_params = [{pipeline_mode = #tpu.pipeline_mode<synchronous>, transform_indices = @transform_0, window_bounds = array<i64: 4, 512>}, {pipeline_mode = #tpu.pipeline_mode<synchronous>, transform_indices = @transform_1, window_bounds = array<i64: 9, 4, 4>}, {pipeline_mode = #tpu.pipeline_mode<synchronous>, transform_indices = @transform_2, window_bounds = array<i64: 9, 4, 4>}, {pipeline_mode = #tpu.pipeline_mode<synchronous>, transform_indices = @transform_3, window_bounds = array<i64: 4, 3>}, {pipeline_mode = #tpu.pipeline_mode<synchronous>, transform_indices = @transform_4, window_bounds = array<i64: 1, 512>}, {pipeline_mode = #tpu.pipeline_mode<synchronous>, transform_indices = @transform_5, window_bounds = array<i64: 4, 512>}]} {
    %c0 = arith.constant 0 : index
    %c0_0 = arith.constant 0 : index
    %0 = vector.load %arg1[%c0, %c0_0] : memref<4x512xf32, #tpu.memory_space<vmem>>, vector<4x512xf32>
    %c0_1 = arith.constant 0 : index
    %c0_2 = arith.constant 0 : index
    %1 = vector.load %arg4[%c0_1, %c0_2] : memref<4x3xf32, #tpu.memory_space<vmem>>, vector<4x3xf32>
    %2 = vector.extract_strided_slice %1 {offsets = [0, 0], sizes = [4, 1], strides = [1, 1]} : vector<4x3xf32> to vector<4x1xf32>
    %3 = vector.extract_strided_slice %1 {offsets = [0, 1], sizes = [4, 1], strides = [1, 1]} : vector<4x3xf32> to vector<4x1xf32>
    %4 = vector.extract_strided_slice %1 {offsets = [0, 2], sizes = [4, 1], strides = [1, 1]} : vector<4x3xf32> to vector<4x1xf32>
    %c0_3 = arith.constant 0 : index
    %c0_4 = arith.constant 0 : index
    %5 = vector.load %arg5[%c0_3, %c0_4] : memref<1x512xi32, #tpu.memory_space<vmem>>, vector<1x512xi32>
    %c1_i32 = arith.constant 1 : i32
    %6 = vector.broadcast %c1_i32 : i32 to vector<1x512xi32>
    %7 = arith.andi %5, %6 : vector<1x512xi32>
    %c0_i32 = arith.constant 0 : i32
    %8 = vector.broadcast %c0_i32 : i32 to vector<1x512xi32>
    %9 = arith.cmpi ne, %7, %8 : vector<1x512xi32>
    %c2_i32 = arith.constant 2 : i32
    %10 = vector.broadcast %c2_i32 : i32 to vector<1x512xi32>
    %11 = arith.andi %5, %10 : vector<1x512xi32>
    %c0_i32_5 = arith.constant 0 : i32
    %12 = vector.broadcast %c0_i32_5 : i32 to vector<1x512xi32>
    %13 = arith.cmpi ne, %11, %12 : vector<1x512xi32>
    %c4_i32 = arith.constant 4 : i32
    %14 = vector.broadcast %c4_i32 : i32 to vector<1x512xi32>
    %15 = arith.andi %5, %14 : vector<1x512xi32>
    %c0_i32_6 = arith.constant 0 : i32
    %16 = vector.broadcast %c0_i32_6 : i32 to vector<1x512xi32>
    %17 = arith.cmpi ne, %15, %16 : vector<1x512xi32>
    %c8_i32 = arith.constant 8 : i32
    %18 = vector.broadcast %c8_i32 : i32 to vector<1x512xi32>
    %19 = arith.andi %5, %18 : vector<1x512xi32>
    %c0_i32_7 = arith.constant 0 : i32
    %20 = vector.broadcast %c0_i32_7 : i32 to vector<1x512xi32>
    %21 = arith.cmpi ne, %19, %20 : vector<1x512xi32>
    %22 = arith.andi %9, %17 : vector<1x512xi1>
    %23 = arith.andi %9, %21 : vector<1x512xi1>
    %24 = arith.andi %13, %17 : vector<1x512xi1>
    %25 = arith.andi %13, %21 : vector<1x512xi1>
    %c4 = arith.constant 4 : index
    %c0_8 = arith.constant 0 : index
    %c0_9 = arith.constant 0 : index
    %26 = vector.load %arg2[%c4, %c0_8, %c0_9] : memref<9x4x4xf32, #tpu.memory_space<vmem>>, vector<1x4x4xf32>
    %27 = vector.shape_cast %26 : vector<1x4x4xf32> to vector<4x4xf32>
    %cst = arith.constant dense<0.000000e+00> : vector<4x512xf32>
    %28 = tpu.matmul %27, %0, %cst {dimension_numbers = #tpu.dot_dimension_numbers<[1], [0], [0], [1], [0, 0, 1, 1], [], []>} : vector<4x4xf32>, vector<4x512xf32>, vector<4x512xf32> -> vector<4x512xf32>
    %c17_i32 = arith.constant 17 : i32
    %29 = tpu.dynamic_rotate %0 by %c17_i32 dim 1 : vector<4x512xf32>, i32 -> vector<4x512xf32>
    %cst_10 = arith.constant 0.000000e+00 : f32
    %30 = vector.shape_cast %22 : vector<1x512xi1> to vector<1x512xi1>
    %31 = vector.broadcast %30 : vector<1x512xi1> to vector<4x512xi1>
    %32 = vector.broadcast %cst_10 : f32 to vector<4x512xf32>
    %33 = arith.select %31, %29, %32 : vector<4x512xi1>, vector<4x512xf32>
    %c0_11 = arith.constant 0 : index
    %c0_12 = arith.constant 0 : index
    %c0_13 = arith.constant 0 : index
    %34 = vector.load %arg2[%c0_11, %c0_12, %c0_13] : memref<9x4x4xf32, #tpu.memory_space<vmem>>, vector<1x4x4xf32>
    %35 = vector.shape_cast %34 : vector<1x4x4xf32> to vector<4x4xf32>
    %cst_14 = arith.constant dense<0.000000e+00> : vector<4x512xf32>
    %36 = tpu.matmul %35, %33, %cst_14 {dimension_numbers = #tpu.dot_dimension_numbers<[1], [0], [0], [1], [0, 0, 1, 1], [], []>} : vector<4x4xf32>, vector<4x512xf32>, vector<4x512xf32> -> vector<4x512xf32>
    %37 = arith.addf %28, %36 : vector<4x512xf32>
    %c16_i32 = arith.constant 16 : i32
    %38 = tpu.dynamic_rotate %0 by %c16_i32 dim 1 : vector<4x512xf32>, i32 -> vector<4x512xf32>
    %cst_15 = arith.constant 0.000000e+00 : f32
    %39 = vector.shape_cast %9 : vector<1x512xi1> to vector<1x512xi1>
    %40 = vector.broadcast %39 : vector<1x512xi1> to vector<4x512xi1>
    %41 = vector.broadcast %cst_15 : f32 to vector<4x512xf32>
    %42 = arith.select %40, %38, %41 : vector<4x512xi1>, vector<4x512xf32>
    %c1 = arith.constant 1 : index
    %c0_16 = arith.constant 0 : index
    %c0_17 = arith.constant 0 : index
    %43 = vector.load %arg2[%c1, %c0_16, %c0_17] : memref<9x4x4xf32, #tpu.memory_space<vmem>>, vector<1x4x4xf32>
    %44 = vector.shape_cast %43 : vector<1x4x4xf32> to vector<4x4xf32>
    %cst_18 = arith.constant dense<0.000000e+00> : vector<4x512xf32>
    %45 = tpu.matmul %44, %42, %cst_18 {dimension_numbers = #tpu.dot_dimension_numbers<[1], [0], [0], [1], [0, 0, 1, 1], [], []>} : vector<4x4xf32>, vector<4x512xf32>, vector<4x512xf32> -> vector<4x512xf32>
    %46 = arith.addf %37, %45 : vector<4x512xf32>
    %c15_i32 = arith.constant 15 : i32
    %47 = tpu.dynamic_rotate %0 by %c15_i32 dim 1 : vector<4x512xf32>, i32 -> vector<4x512xf32>
    %cst_19 = arith.constant 0.000000e+00 : f32
    %48 = vector.shape_cast %23 : vector<1x512xi1> to vector<1x512xi1>
    %49 = vector.broadcast %48 : vector<1x512xi1> to vector<4x512xi1>
    %50 = vector.broadcast %cst_19 : f32 to vector<4x512xf32>
    %51 = arith.select %49, %47, %50 : vector<4x512xi1>, vector<4x512xf32>
    %c2 = arith.constant 2 : index
    %c0_20 = arith.constant 0 : index
    %c0_21 = arith.constant 0 : index
    %52 = vector.load %arg2[%c2, %c0_20, %c0_21] : memref<9x4x4xf32, #tpu.memory_space<vmem>>, vector<1x4x4xf32>
    %53 = vector.shape_cast %52 : vector<1x4x4xf32> to vector<4x4xf32>
    %cst_22 = arith.constant dense<0.000000e+00> : vector<4x512xf32>
    %54 = tpu.matmul %53, %51, %cst_22 {dimension_numbers = #tpu.dot_dimension_numbers<[1], [0], [0], [1], [0, 0, 1, 1], [], []>} : vector<4x4xf32>, vector<4x512xf32>, vector<4x512xf32> -> vector<4x512xf32>
    %55 = arith.addf %46, %54 : vector<4x512xf32>
    %c1_i32_23 = arith.constant 1 : i32
    %56 = tpu.dynamic_rotate %0 by %c1_i32_23 dim 1 : vector<4x512xf32>, i32 -> vector<4x512xf32>
    %cst_24 = arith.constant 0.000000e+00 : f32
    %57 = vector.shape_cast %17 : vector<1x512xi1> to vector<1x512xi1>
    %58 = vector.broadcast %57 : vector<1x512xi1> to vector<4x512xi1>
    %59 = vector.broadcast %cst_24 : f32 to vector<4x512xf32>
    %60 = arith.select %58, %56, %59 : vector<4x512xi1>, vector<4x512xf32>
    %c3 = arith.constant 3 : index
    %c0_25 = arith.constant 0 : index
    %c0_26 = arith.constant 0 : index
    %61 = vector.load %arg2[%c3, %c0_25, %c0_26] : memref<9x4x4xf32, #tpu.memory_space<vmem>>, vector<1x4x4xf32>
    %62 = vector.shape_cast %61 : vector<1x4x4xf32> to vector<4x4xf32>
    %cst_27 = arith.constant dense<0.000000e+00> : vector<4x512xf32>
    %63 = tpu.matmul %62, %60, %cst_27 {dimension_numbers = #tpu.dot_dimension_numbers<[1], [0], [0], [1], [0, 0, 1, 1], [], []>} : vector<4x4xf32>, vector<4x512xf32>, vector<4x512xf32> -> vector<4x512xf32>
    %64 = arith.addf %55, %63 : vector<4x512xf32>
    %c511_i32 = arith.constant 511 : i32
    %65 = tpu.dynamic_rotate %0 by %c511_i32 dim 1 : vector<4x512xf32>, i32 -> vector<4x512xf32>
    %cst_28 = arith.constant 0.000000e+00 : f32
    %66 = vector.shape_cast %21 : vector<1x512xi1> to vector<1x512xi1>
    %67 = vector.broadcast %66 : vector<1x512xi1> to vector<4x512xi1>
    %68 = vector.broadcast %cst_28 : f32 to vector<4x512xf32>
    %69 = arith.select %67, %65, %68 : vector<4x512xi1>, vector<4x512xf32>
    %c5 = arith.constant 5 : index
    %c0_29 = arith.constant 0 : index
    %c0_30 = arith.constant 0 : index
    %70 = vector.load %arg2[%c5, %c0_29, %c0_30] : memref<9x4x4xf32, #tpu.memory_space<vmem>>, vector<1x4x4xf32>
    %71 = vector.shape_cast %70 : vector<1x4x4xf32> to vector<4x4xf32>
    %cst_31 = arith.constant dense<0.000000e+00> : vector<4x512xf32>
    %72 = tpu.matmul %71, %69, %cst_31 {dimension_numbers = #tpu.dot_dimension_numbers<[1], [0], [0], [1], [0, 0, 1, 1], [], []>} : vector<4x4xf32>, vector<4x512xf32>, vector<4x512xf32> -> vector<4x512xf32>
    %73 = arith.addf %64, %72 : vector<4x512xf32>
    %c497_i32 = arith.constant 497 : i32
    %74 = tpu.dynamic_rotate %0 by %c497_i32 dim 1 : vector<4x512xf32>, i32 -> vector<4x512xf32>
    %cst_32 = arith.constant 0.000000e+00 : f32
    %75 = vector.shape_cast %24 : vector<1x512xi1> to vector<1x512xi1>
    %76 = vector.broadcast %75 : vector<1x512xi1> to vector<4x512xi1>
    %77 = vector.broadcast %cst_32 : f32 to vector<4x512xf32>
    %78 = arith.select %76, %74, %77 : vector<4x512xi1>, vector<4x512xf32>
    %c6 = arith.constant 6 : index
    %c0_33 = arith.constant 0 : index
    %c0_34 = arith.constant 0 : index
    %79 = vector.load %arg2[%c6, %c0_33, %c0_34] : memref<9x4x4xf32, #tpu.memory_space<vmem>>, vector<1x4x4xf32>
    %80 = vector.shape_cast %79 : vector<1x4x4xf32> to vector<4x4xf32>
    %cst_35 = arith.constant dense<0.000000e+00> : vector<4x512xf32>
    %81 = tpu.matmul %80, %78, %cst_35 {dimension_numbers = #tpu.dot_dimension_numbers<[1], [0], [0], [1], [0, 0, 1, 1], [], []>} : vector<4x4xf32>, vector<4x512xf32>, vector<4x512xf32> -> vector<4x512xf32>
    %82 = arith.addf %73, %81 : vector<4x512xf32>
    %c496_i32 = arith.constant 496 : i32
    %83 = tpu.dynamic_rotate %0 by %c496_i32 dim 1 : vector<4x512xf32>, i32 -> vector<4x512xf32>
    %cst_36 = arith.constant 0.000000e+00 : f32
    %84 = vector.shape_cast %13 : vector<1x512xi1> to vector<1x512xi1>
    %85 = vector.broadcast %84 : vector<1x512xi1> to vector<4x512xi1>
    %86 = vector.broadcast %cst_36 : f32 to vector<4x512xf32>
    %87 = arith.select %85, %83, %86 : vector<4x512xi1>, vector<4x512xf32>
    %c7 = arith.constant 7 : index
    %c0_37 = arith.constant 0 : index
    %c0_38 = arith.constant 0 : index
    %88 = vector.load %arg2[%c7, %c0_37, %c0_38] : memref<9x4x4xf32, #tpu.memory_space<vmem>>, vector<1x4x4xf32>
    %89 = vector.shape_cast %88 : vector<1x4x4xf32> to vector<4x4xf32>
    %cst_39 = arith.constant dense<0.000000e+00> : vector<4x512xf32>
    %90 = tpu.matmul %89, %87, %cst_39 {dimension_numbers = #tpu.dot_dimension_numbers<[1], [0], [0], [1], [0, 0, 1, 1], [], []>} : vector<4x4xf32>, vector<4x512xf32>, vector<4x512xf32> -> vector<4x512xf32>
    %91 = arith.addf %82, %90 : vector<4x512xf32>
    %c495_i32 = arith.constant 495 : i32
    %92 = tpu.dynamic_rotate %0 by %c495_i32 dim 1 : vector<4x512xf32>, i32 -> vector<4x512xf32>
    %cst_40 = arith.constant 0.000000e+00 : f32
    %93 = vector.shape_cast %25 : vector<1x512xi1> to vector<1x512xi1>
    %94 = vector.broadcast %93 : vector<1x512xi1> to vector<4x512xi1>
    %95 = vector.broadcast %cst_40 : f32 to vector<4x512xf32>
    %96 = arith.select %94, %92, %95 : vector<4x512xi1>, vector<4x512xf32>
    %c8 = arith.constant 8 : index
    %c0_41 = arith.constant 0 : index
    %c0_42 = arith.constant 0 : index
    %97 = vector.load %arg2[%c8, %c0_41, %c0_42] : memref<9x4x4xf32, #tpu.memory_space<vmem>>, vector<1x4x4xf32>
    %98 = vector.shape_cast %97 : vector<1x4x4xf32> to vector<4x4xf32>
    %cst_43 = arith.constant dense<0.000000e+00> : vector<4x512xf32>
    %99 = tpu.matmul %98, %96, %cst_43 {dimension_numbers = #tpu.dot_dimension_numbers<[1], [0], [0], [1], [0, 0, 1, 1], [], []>} : vector<4x4xf32>, vector<4x512xf32>, vector<4x512xf32> -> vector<4x512xf32>
    %100 = arith.addf %91, %99 : vector<4x512xf32>
    %101 = vector.broadcast %2 : vector<4x1xf32> to vector<4x512xf32>
    %102 = arith.addf %100, %101 : vector<4x512xf32>
    %cst_44 = arith.constant 0.000000e+00 : f32
    %103 = vector.broadcast %cst_44 : f32 to vector<4x512xf32>
    %104 = arith.cmpf ogt, %102, %103 : vector<4x512xf32>
    %105 = vector.broadcast %3 : vector<4x1xf32> to vector<4x512xf32>
    %106 = arith.mulf %105, %102 : vector<4x512xf32>
    %107 = arith.select %104, %102, %106 : vector<4x512xi1>, vector<4x512xf32>
    %c4_45 = arith.constant 4 : index
    %c0_46 = arith.constant 0 : index
    %c0_47 = arith.constant 0 : index
    %108 = vector.load %arg3[%c4_45, %c0_46, %c0_47] : memref<9x4x4xf32, #tpu.memory_space<vmem>>, vector<1x4x4xf32>
    %109 = vector.shape_cast %108 : vector<1x4x4xf32> to vector<4x4xf32>
    %cst_48 = arith.constant dense<0.000000e+00> : vector<4x512xf32>
    %110 = tpu.matmul %109, %107, %cst_48 {dimension_numbers = #tpu.dot_dimension_numbers<[1], [0], [0], [1], [0, 0, 1, 1], [], []>} : vector<4x4xf32>, vector<4x512xf32>, vector<4x512xf32> -> vector<4x512xf32>
    %c17_i32_49 = arith.constant 17 : i32
    %111 = tpu.dynamic_rotate %107 by %c17_i32_49 dim 1 : vector<4x512xf32>, i32 -> vector<4x512xf32>
    %cst_50 = arith.constant 0.000000e+00 : f32
    %112 = vector.shape_cast %22 : vector<1x512xi1> to vector<1x512xi1>
    %113 = vector.broadcast %112 : vector<1x512xi1> to vector<4x512xi1>
    %114 = vector.broadcast %cst_50 : f32 to vector<4x512xf32>
    %115 = arith.select %113, %111, %114 : vector<4x512xi1>, vector<4x512xf32>
    %c0_51 = arith.constant 0 : index
    %c0_52 = arith.constant 0 : index
    %c0_53 = arith.constant 0 : index
    %116 = vector.load %arg3[%c0_51, %c0_52, %c0_53] : memref<9x4x4xf32, #tpu.memory_space<vmem>>, vector<1x4x4xf32>
    %117 = vector.shape_cast %116 : vector<1x4x4xf32> to vector<4x4xf32>
    %cst_54 = arith.constant dense<0.000000e+00> : vector<4x512xf32>
    %118 = tpu.matmul %117, %115, %cst_54 {dimension_numbers = #tpu.dot_dimension_numbers<[1], [0], [0], [1], [0, 0, 1, 1], [], []>} : vector<4x4xf32>, vector<4x512xf32>, vector<4x512xf32> -> vector<4x512xf32>
    %119 = arith.addf %110, %118 : vector<4x512xf32>
    %c16_i32_55 = arith.constant 16 : i32
    %120 = tpu.dynamic_rotate %107 by %c16_i32_55 dim 1 : vector<4x512xf32>, i32 -> vector<4x512xf32>
    %cst_56 = arith.constant 0.000000e+00 : f32
    %121 = vector.shape_cast %9 : vector<1x512xi1> to vector<1x512xi1>
    %122 = vector.broadcast %121 : vector<1x512xi1> to vector<4x512xi1>
    %123 = vector.broadcast %cst_56 : f32 to vector<4x512xf32>
    %124 = arith.select %122, %120, %123 : vector<4x512xi1>, vector<4x512xf32>
    %c1_57 = arith.constant 1 : index
    %c0_58 = arith.constant 0 : index
    %c0_59 = arith.constant 0 : index
    %125 = vector.load %arg3[%c1_57, %c0_58, %c0_59] : memref<9x4x4xf32, #tpu.memory_space<vmem>>, vector<1x4x4xf32>
    %126 = vector.shape_cast %125 : vector<1x4x4xf32> to vector<4x4xf32>
    %cst_60 = arith.constant dense<0.000000e+00> : vector<4x512xf32>
    %127 = tpu.matmul %126, %124, %cst_60 {dimension_numbers = #tpu.dot_dimension_numbers<[1], [0], [0], [1], [0, 0, 1, 1], [], []>} : vector<4x4xf32>, vector<4x512xf32>, vector<4x512xf32> -> vector<4x512xf32>
    %128 = arith.addf %119, %127 : vector<4x512xf32>
    %c15_i32_61 = arith.constant 15 : i32
    %129 = tpu.dynamic_rotate %107 by %c15_i32_61 dim 1 : vector<4x512xf32>, i32 -> vector<4x512xf32>
    %cst_62 = arith.constant 0.000000e+00 : f32
    %130 = vector.shape_cast %23 : vector<1x512xi1> to vector<1x512xi1>
    %131 = vector.broadcast %130 : vector<1x512xi1> to vector<4x512xi1>
    %132 = vector.broadcast %cst_62 : f32 to vector<4x512xf32>
    %133 = arith.select %131, %129, %132 : vector<4x512xi1>, vector<4x512xf32>
    %c2_63 = arith.constant 2 : index
    %c0_64 = arith.constant 0 : index
    %c0_65 = arith.constant 0 : index
    %134 = vector.load %arg3[%c2_63, %c0_64, %c0_65] : memref<9x4x4xf32, #tpu.memory_space<vmem>>, vector<1x4x4xf32>
    %135 = vector.shape_cast %134 : vector<1x4x4xf32> to vector<4x4xf32>
    %cst_66 = arith.constant dense<0.000000e+00> : vector<4x512xf32>
    %136 = tpu.matmul %135, %133, %cst_66 {dimension_numbers = #tpu.dot_dimension_numbers<[1], [0], [0], [1], [0, 0, 1, 1], [], []>} : vector<4x4xf32>, vector<4x512xf32>, vector<4x512xf32> -> vector<4x512xf32>
    %137 = arith.addf %128, %136 : vector<4x512xf32>
    %c1_i32_67 = arith.constant 1 : i32
    %138 = tpu.dynamic_rotate %107 by %c1_i32_67 dim 1 : vector<4x512xf32>, i32 -> vector<4x512xf32>
    %cst_68 = arith.constant 0.000000e+00 : f32
    %139 = vector.shape_cast %17 : vector<1x512xi1> to vector<1x512xi1>
    %140 = vector.broadcast %139 : vector<1x512xi1> to vector<4x512xi1>
    %141 = vector.broadcast %cst_68 : f32 to vector<4x512xf32>
    %142 = arith.select %140, %138, %141 : vector<4x512xi1>, vector<4x512xf32>
    %c3_69 = arith.constant 3 : index
    %c0_70 = arith.constant 0 : index
    %c0_71 = arith.constant 0 : index
    %143 = vector.load %arg3[%c3_69, %c0_70, %c0_71] : memref<9x4x4xf32, #tpu.memory_space<vmem>>, vector<1x4x4xf32>
    %144 = vector.shape_cast %143 : vector<1x4x4xf32> to vector<4x4xf32>
    %cst_72 = arith.constant dense<0.000000e+00> : vector<4x512xf32>
    %145 = tpu.matmul %144, %142, %cst_72 {dimension_numbers = #tpu.dot_dimension_numbers<[1], [0], [0], [1], [0, 0, 1, 1], [], []>} : vector<4x4xf32>, vector<4x512xf32>, vector<4x512xf32> -> vector<4x512xf32>
    %146 = arith.addf %137, %145 : vector<4x512xf32>
    %c511_i32_73 = arith.constant 511 : i32
    %147 = tpu.dynamic_rotate %107 by %c511_i32_73 dim 1 : vector<4x512xf32>, i32 -> vector<4x512xf32>
    %cst_74 = arith.constant 0.000000e+00 : f32
    %148 = vector.shape_cast %21 : vector<1x512xi1> to vector<1x512xi1>
    %149 = vector.broadcast %148 : vector<1x512xi1> to vector<4x512xi1>
    %150 = vector.broadcast %cst_74 : f32 to vector<4x512xf32>
    %151 = arith.select %149, %147, %150 : vector<4x512xi1>, vector<4x512xf32>
    %c5_75 = arith.constant 5 : index
    %c0_76 = arith.constant 0 : index
    %c0_77 = arith.constant 0 : index
    %152 = vector.load %arg3[%c5_75, %c0_76, %c0_77] : memref<9x4x4xf32, #tpu.memory_space<vmem>>, vector<1x4x4xf32>
    %153 = vector.shape_cast %152 : vector<1x4x4xf32> to vector<4x4xf32>
    %cst_78 = arith.constant dense<0.000000e+00> : vector<4x512xf32>
    %154 = tpu.matmul %153, %151, %cst_78 {dimension_numbers = #tpu.dot_dimension_numbers<[1], [0], [0], [1], [0, 0, 1, 1], [], []>} : vector<4x4xf32>, vector<4x512xf32>, vector<4x512xf32> -> vector<4x512xf32>
    %155 = arith.addf %146, %154 : vector<4x512xf32>
    %c497_i32_79 = arith.constant 497 : i32
    %156 = tpu.dynamic_rotate %107 by %c497_i32_79 dim 1 : vector<4x512xf32>, i32 -> vector<4x512xf32>
    %cst_80 = arith.constant 0.000000e+00 : f32
    %157 = vector.shape_cast %24 : vector<1x512xi1> to vector<1x512xi1>
    %158 = vector.broadcast %157 : vector<1x512xi1> to vector<4x512xi1>
    %159 = vector.broadcast %cst_80 : f32 to vector<4x512xf32>
    %160 = arith.select %158, %156, %159 : vector<4x512xi1>, vector<4x512xf32>
    %c6_81 = arith.constant 6 : index
    %c0_82 = arith.constant 0 : index
    %c0_83 = arith.constant 0 : index
    %161 = vector.load %arg3[%c6_81, %c0_82, %c0_83] : memref<9x4x4xf32, #tpu.memory_space<vmem>>, vector<1x4x4xf32>
    %162 = vector.shape_cast %161 : vector<1x4x4xf32> to vector<4x4xf32>
    %cst_84 = arith.constant dense<0.000000e+00> : vector<4x512xf32>
    %163 = tpu.matmul %162, %160, %cst_84 {dimension_numbers = #tpu.dot_dimension_numbers<[1], [0], [0], [1], [0, 0, 1, 1], [], []>} : vector<4x4xf32>, vector<4x512xf32>, vector<4x512xf32> -> vector<4x512xf32>
    %164 = arith.addf %155, %163 : vector<4x512xf32>
    %c496_i32_85 = arith.constant 496 : i32
    %165 = tpu.dynamic_rotate %107 by %c496_i32_85 dim 1 : vector<4x512xf32>, i32 -> vector<4x512xf32>
    %cst_86 = arith.constant 0.000000e+00 : f32
    %166 = vector.shape_cast %13 : vector<1x512xi1> to vector<1x512xi1>
    %167 = vector.broadcast %166 : vector<1x512xi1> to vector<4x512xi1>
    %168 = vector.broadcast %cst_86 : f32 to vector<4x512xf32>
    %169 = arith.select %167, %165, %168 : vector<4x512xi1>, vector<4x512xf32>
    %c7_87 = arith.constant 7 : index
    %c0_88 = arith.constant 0 : index
    %c0_89 = arith.constant 0 : index
    %170 = vector.load %arg3[%c7_87, %c0_88, %c0_89] : memref<9x4x4xf32, #tpu.memory_space<vmem>>, vector<1x4x4xf32>
    %171 = vector.shape_cast %170 : vector<1x4x4xf32> to vector<4x4xf32>
    %cst_90 = arith.constant dense<0.000000e+00> : vector<4x512xf32>
    %172 = tpu.matmul %171, %169, %cst_90 {dimension_numbers = #tpu.dot_dimension_numbers<[1], [0], [0], [1], [0, 0, 1, 1], [], []>} : vector<4x4xf32>, vector<4x512xf32>, vector<4x512xf32> -> vector<4x512xf32>
    %173 = arith.addf %164, %172 : vector<4x512xf32>
    %c495_i32_91 = arith.constant 495 : i32
    %174 = tpu.dynamic_rotate %107 by %c495_i32_91 dim 1 : vector<4x512xf32>, i32 -> vector<4x512xf32>
    %cst_92 = arith.constant 0.000000e+00 : f32
    %175 = vector.shape_cast %25 : vector<1x512xi1> to vector<1x512xi1>
    %176 = vector.broadcast %175 : vector<1x512xi1> to vector<4x512xi1>
    %177 = vector.broadcast %cst_92 : f32 to vector<4x512xf32>
    %178 = arith.select %176, %174, %177 : vector<4x512xi1>, vector<4x512xf32>
    %c8_93 = arith.constant 8 : index
    %c0_94 = arith.constant 0 : index
    %c0_95 = arith.constant 0 : index
    %179 = vector.load %arg3[%c8_93, %c0_94, %c0_95] : memref<9x4x4xf32, #tpu.memory_space<vmem>>, vector<1x4x4xf32>
    %180 = vector.shape_cast %179 : vector<1x4x4xf32> to vector<4x4xf32>
    %cst_96 = arith.constant dense<0.000000e+00> : vector<4x512xf32>
    %181 = tpu.matmul %180, %178, %cst_96 {dimension_numbers = #tpu.dot_dimension_numbers<[1], [0], [0], [1], [0, 0, 1, 1], [], []>} : vector<4x4xf32>, vector<4x512xf32>, vector<4x512xf32> -> vector<4x512xf32>
    %182 = arith.addf %173, %181 : vector<4x512xf32>
    %183 = vector.broadcast %4 : vector<4x1xf32> to vector<4x512xf32>
    %184 = arith.addf %182, %183 : vector<4x512xf32>
    %185 = arith.addf %0, %184 : vector<4x512xf32>
    %c0_97 = arith.constant 0 : index
    %c0_98 = arith.constant 0 : index
    %186 = vector.load %arg6[%c0_97, %c0_98] : memref<4x512xf32, #tpu.memory_space<vmem>>, vector<4x512xf32>
    tpu.vector_store %arg6[%c0_97, %c0_98], %185 {strides = array<i32>} : memref<4x512xf32, #tpu.memory_space<vmem>>, vector<4x512xf32>,
    return
  }
  func.func @transform_0(%arg0: i32) -> (i32, i32) {
    %c0_i32 = arith.constant 0 : i32
    %c0_i32_0 = arith.constant 0 : i32
    %c0_i32_1 = arith.constant 0 : i32
    return %c0_i32, %c0_i32_0 : i32, i32
  }
  func.func @transform_1(%arg0: i32) -> (i32, i32, i32) {
    %c0_i32 = arith.constant 0 : i32
    %c0_i32_0 = arith.constant 0 : i32
    %c0_i32_1 = arith.constant 0 : i32
    %c0_i32_2 = arith.constant 0 : i32
    return %c0_i32, %c0_i32_0, %c0_i32_1 : i32, i32, i32
  }
  func.func @transform_2(%arg0: i32) -> (i32, i32, i32) {
    %c0_i32 = arith.constant 0 : i32
    %c0_i32_0 = arith.constant 0 : i32
    %c0_i32_1 = arith.constant 0 : i32
    %c0_i32_2 = arith.constant 0 : i32
    return %c0_i32, %c0_i32_0, %c0_i32_1 : i32, i32, i32
  }
  func.func @transform_3(%arg0: i32) -> (i32, i32) {
    %c0_i32 = arith.constant 0 : i32
    %c0_i32_0 = arith.constant 0 : i32
    %c0_i32_1 = arith.constant 0 : i32
    return %c0_i32, %c0_i32_0 : i32, i32
  }
  func.func @transform_4(%arg0: i32) -> (i32, i32) {
    %c0_i32 = arith.constant 0 : i32
    %c0_i32_0 = arith.constant 0 : i32
    %c0_i32_1 = arith.constant 0 : i32
    return %c0_i32, %c0_i32_0 : i32, i32
  }
  func.func @transform_5(%arg0: i32) -> (i32, i32) {
    %c0_i32 = arith.constant 0 : i32
    %c0_i32_0 = arith.constant 0 : i32
    %c0_i32_1 = arith.constant 0 : i32
    return %c0_i32, %c0_i32_0 : i32, i32
  }
}

</mosaic_0001>

<bundles_post_ra>
// kernel: tpu_custom_call.1
= control target key start
LH: loop header
LB: loop body
LE: loop exit
PB: predicated region body
PF: predicated region fallthrough
CT: control target
= control target key end

     0   :  { %s3683_s22 = smov 17   ;;  %v3684_v4 = vmov 0   ;;  %v3685_v5 = vmov 0.0   ;;  %s4576_s0 = inlined_call_operand.vmem [shape: f32[4,512], index: 0, kind: input, shape index: {}]   ;;  %s4577_s1 = inlined_call_operand.vmem [shape: f32[9,4,4], index: 1, kind: input, shape index: {}]   ;;  %s4578_s2 = inlined_call_operand.vmem [shape: f32[9,4,4], index: 2, kind: input, shape index: {}]   ;;  %s4579_s3 = inlined_call_operand.vmem [shape: f32[4,3], index: 3, kind: input, shape index: {}]   ;;  %s4580_s4 = inlined_call_operand.vmem [shape: s32[1,512], index: 4, kind: input, shape index: {}]   ;;  %s4581_s5 = inlined_call_operand.hbm [shape: f32[4,512], index: 5, kind: output, shape index: {}]  }
   0x1   :  { %v3729_v0 = vld [vmem:[%s4576_s0 + $0x8] sm:$0xff]  ;;  %v3734_v1 = vld [vmem:[%s4576_s0] sm:$0xff]  ;;  %3651 = vset.pattern.permute.xlu0 %v3684_v4  ;;  %167 = vmatprep.mubr.f32.mxu0 %v3685_v5 }
   0x2   :  { %49 = vrot.lane.b32.xlu1 %v3729_v0, %s3683_s22  ;;  %45 = vrot.lane.b32.xlu0 %v3734_v1, %s3683_s22  ;;  %v3742_v2 = vcombine.high %v3729_v0, %v3729_v0  ;;  %v3746_v3 = vcombine.high %v3734_v1, %v3734_v1 }
   0x3   :  { %238 = vmatprep.mubr.f32.mxu1 %v3685_v5 }
   0x6   :  { %51 = vrot.lane.b32.xlu1 %v3742_v2, %s3683_s22  ;;  %47 = vrot.lane.b32.xlu0 %v3746_v3, %s3683_s22 }
   0x7   :  { %10 = vsyncpa [#allocation3], 0  ;;  %s3686_s23 = smov 16   ;;  %s3687_s24 = smov 15   ;;  %v3814_v6 = vld [vmem:[%s4579_s3] sm:$0xf]  ;;  %v53_v11 = vlaneseq }
   0x8   :  { %s3688_s25 = smov 1   ;;  %s3689_s26 = smov 127   ;;  %v3693_v7 = vmov 1   ;;  %v3821_v8 = vld [vmem:[%s4580_s4] sm:$0xf]  ;;  %vm4585_vm9 = vcmask 1043456  }
   0x9   :  { %s3690_s27 = smov 113   ;;  %s3691_s28 = smov 112   ;;  %3652 = vset.pattern.permute.xlu1 %v3693_v7  ;;  %v25_v9 = vand.u32 1, %v3821_v8  ;;  %v29_v10 = vand.u32 4, %v3821_v8  ;;  %v62_v14 = vshrl.u32 %v53_v11, 7  ;;  %v3846_v20 = vand.u32 127, %v53_v11 }
   0xa   :  { %400 = vrot.lane.b32.xlu1 %v3746_v3, %s3686_s23  ;;  %398 = vrot.lane.b32.xlu0 %v3734_v1, %s3686_s23  ;;  %s3692_s29 = smov 111   ;;  %v31_v22 = vand.u32 8, %v3821_v8  ;;  %vm4584_vm10 = vcmask 31744   ;;  %v85_v45 = vld [vmem:[%s4577_s1] sm:$0xf]  ;;  %v4630_v55 = vmov 0 }
   0xb   :  { %vm3825_vm0 = vcmp.ne.s32.totalorder %v25_v9, 0  ;;  %vm3829_vm1 = vcmp.ne.s32.totalorder %v29_v10, 0  ;;  %v3837_v15 = vsub.s32 1, %v62_v14  ;;  %v3839_v16 = vsub.s32 3, %v62_v14  ;;  %s3695_s15 = smov [#allocation2]  }
   0xc   :  { %vm33_vm2 = vmand %vm3825_vm0, %vm3829_vm1  ;;  %v3841_v17 = vsub.s32 0, %v62_v14  ;;  %v3843_v18 = vsub.s32 2, %v62_v14  ;;  %v411_v21 = vsel %vm3825_vm0, 1, %v3684_v4  ;;  %vm4583_vm3 = vcmp.lt.s32.totalorder %v3846_v20, 17  ;;  %s3442_s16 = sshll.u32 %s3695_s15, 4  ;;  %s3443_s16 = int_to_ptr.vmem [resolvable:$true] %s3442_s16 }
   0xd   :  { %v60_v19 = vsel %vm33_vm2, 1, %v3684_v4  ;;  %v419_v29 = vrot.slane %v411_v21, %v3837_v15  ;;  %vm3858_vm4 = vcmp.ne.s32.totalorder %v31_v22, 0  ;;  %vm4582_vm11 = vcmp.lt.s32.totalorder %v3846_v20, 16  ;;  %s3659_s20 = scalar_lea.vmem %s3443_s16, 256  ;;  %p3664_p1 = scmp.lt.s32.totalorder %s3443_s16, %s3443_s16 }
   0xe   :  { %404 = vrot.lane.b32.xlu1 %v3742_v2, %s3686_s23  ;;  %402 = vrot.lane.b32.xlu0 %v3729_v0, %s3686_s23  ;;  %v68_v23 = vrot.slane %v60_v19, %v3837_v15  ;;  %v76_v24 = vrot.slane %v60_v19, %v3839_v16  ;;  %v64_v25 = vrot.slane %v60_v19, %v3841_v17  ;;  %vm34_vm12 = vmand %vm3825_vm0, %vm3858_vm4  ;;  %v4632_v57 = vmov 0  ;;  %p3660_p0 = scmp.ne.s32.totalorder %s3443_s16, %s3659_s20  ;;  %p3665_p2 = scmp.lt.s32.totalorder %s3659_s20, %s3659_s20 }
   0xf   :  { %v72_v26 = vrot.slane %v60_v19, %v3843_v18  ;;  %vm3904_vm13 = vcmp.eq.s32.totalorder %v419_v29, 1  ;;  %v427_v47 = vrot.slane %v411_v21, %v3839_v16  ;;  %v415_v50 = vrot.slane %v411_v21, %v3841_v17 }
  0x10   :  { %vm3862_vm5 = vcmp.eq.s32.totalorder %v68_v23, 1  ;;  %vm3866_vm6 = vcmp.eq.s32.totalorder %v76_v24, 1  ;;  %vm3870_vm7 = vcmp.eq.s32.totalorder %v64_v25, 1  ;;  %v423_v51 = vrot.slane %v411_v21, %v3843_v18  ;;  %p3666_p3 = por %p3665_p2, %p3664_p1 }
  0x11   :  { %vm3874_vm8 = vcmp.eq.s32.totalorder %v72_v26, 1  ;;  %v612_v52 = vsel %vm34_vm12, 1, %v3684_v4  ;;  %vm3931_vm14 = vcmp.eq.s32.totalorder %v427_v47, 1  ;;  %vm3938_vm15 = vcmp.eq.s32.totalorder %v415_v50, 1 }
  0x12   :  { %601 = vrot.lane.b32.xlu1 %v3746_v3, %s3687_s24  ;;  %599 = vrot.lane.b32.xlu0 %v3734_v1, %s3687_s24  ;;  %v4631_v55 = vsel %vm3931_vm14, 4294967295, %v4630_v55  ;;  %v620_v56 = vrot.slane %v612_v52, %v3837_v15  ;;  %v4633_v57 = vsel %vm3938_vm15, 4294967295, %v4632_v57  ;;  %vm3942_vm0 = vcmp.eq.s32.totalorder %v423_v51, 1  ;;  %p3667_p4 = pnand %p3666_p3, %p3660_p0 }
  0x13   :  { %v4634_v59 = vmov 0  ;;  %vm4588_vm2 = vcmp.lt.s32.totalorder %v3846_v20, 15  ;;  %v4636_v7 = vmov 0  ;;  %v628_v9 = vrot.slane %v612_v52, %v3839_v16 }
  0x14   :  { %v4635_v59 = vsel %vm3942_vm0, 4294967295, %v4634_v59  ;;  %vm3966_vm12 = vcmp.eq.s32.totalorder %v620_v56, 1  ;;  %v616_v12 = vrot.slane %v612_v52, %v3841_v17  ;;  %v624_v14 = vrot.slane %v612_v52, %v3843_v18 }
  0x15   :  { %v4637_v7 = vsel %vm3966_vm12, 4294967295, %v4636_v7  ;;  %v813_v19 = vsel %vm3829_vm1, 1, %v3684_v4  ;;  %v4638_v23 = vmov 0  ;;  %v4640_v25 = vmov 0 }
  0x16   :  { %605 = vrot.lane.b32.xlu1 %v3742_v2, %s3687_s24  ;;  %603 = vrot.lane.b32.xlu0 %v3729_v0, %s3687_s24  ;;  %v821_v24 = vrot.slane %v813_v19, %v3837_v15  ;;  %v825_v47 = vrot.slane %v813_v19, %v3843_v18  ;;  %v27_v50 = vand.u32 2, %v3821_v8  ;;  %v4651_v51 = vmov 0 }
  0x17   :  { %v4654_v52 = vmov 0  ;;  %v1014_v8 = vsel %vm3858_vm4, 1, %v3684_v4  ;;  %v4672_v13 = vmov 0  ;;  %v4696_v30 = vmov 0 }
  0x1a   :  { %802 = vrot.lane.b32.xlu1 %v3746_v3, %s3688_s25  ;;  %800 = vrot.lane.b32.xlu0 %v3734_v1, %s3688_s25 }
  0x1e   :  { %806 = vrot.lane.b32.xlu1 %v3742_v2, %s3688_s25  ;;  %804 = vrot.lane.b32.xlu0 %v3729_v0, %s3688_s25 }
  0x22   :  { %1003 = vrot.lane.b32.xlu1 %v3746_v3, %s3689_s26  ;;  %1001 = vrot.lane.b32.xlu0 %v3734_v1, %s3689_s26 }
  0x26   :  { %1007 = vrot.lane.b32.xlu1 %v3742_v2, %s3689_s26  ;;  %1005 = vrot.lane.b32.xlu0 %v3729_v0, %s3689_s26 }
  0x2a   :  { %1204 = vrot.lane.b32.xlu1 %v3746_v3, %s3690_s27  ;;  %1202 = vrot.lane.b32.xlu0 %v3734_v1, %s3690_s27 }
  0x2e   :  { %1208 = vrot.lane.b32.xlu1 %v3742_v2, %s3690_s27  ;;  %1206 = vrot.lane.b32.xlu0 %v3729_v0, %s3690_s27 }
  0x32   :  { %1405 = vrot.lane.b32.xlu1 %v3746_v3, %s3691_s28  ;;  %1403 = vrot.lane.b32.xlu0 %v3734_v1, %s3691_s28 }
  0x36   :  { %1409 = vrot.lane.b32.xlu1 %v3742_v2, %s3691_s28  ;;  %1407 = vrot.lane.b32.xlu0 %v3729_v0, %s3691_s28 }
  0x3a   :  { %1606 = vrot.lane.b32.xlu1 %v3746_v3, %s3692_s29  ;;  %1604 = vrot.lane.b32.xlu0 %v3734_v1, %s3692_s29 }
  0x3e   :  { %1610 = vrot.lane.b32.xlu1 %v3742_v2, %s3692_s29  ;;  %1608 = vrot.lane.b32.xlu0 %v3729_v0, %s3692_s29 }
  0x42   :  { %1807 = vperm.xlu0 %3651, %v3814_v6   ;;  %1819 = vperm.xlu1 %3652, %v3814_v6  }
  0x74   :  { %v50_v27 = vpop.permute.xlu1 %49  ;;  %v46_v28 = vpop.permute.xlu0 %45 }
  0x78   :  { %v52_v35 = vpop.permute.xlu1 %51  ;;  %v48_v36 = vpop.permute.xlu0 %47 }
  0x79   :  { %v59_v37 = vsel %vm4583_vm3, %v52_v35, %v46_v28  ;;  %v57_v38 = vsel %vm4583_vm3, %v48_v36, %v50_v27  ;;  %v58_v39 = vsel %vm4583_vm3, %v46_v28, %v48_v36  ;;  %v56_v40 = vsel %vm4583_vm3, %v50_v27, %v52_v35 }
  0x7a   :  { %v82_v41 = vsel %vm3862_vm5, %v58_v39, 0.0  ;;  %v84_v42 = vsel %vm3866_vm6, %v56_v40, 0.0  ;;  %v81_v43 = vsel %vm3870_vm7, %v59_v37, 0.0  ;;  %v83_v44 = vsel %vm3874_vm8, %v57_v38, 0.0  ;;  %v3463_v38 = vld [vmem:[%s4577_s1 + $0x4] sm:$0xf] }
  0x7b   :  { %3451 = vmatprep.subr.msk.mxu0 %vm4585_vm9, %v82_v41  ;;  %3454 = vmatprep.subr.msk.mxu1 %vm4585_vm9, %v84_v42  ;;  %vm3991_vm3 = vcmp.eq.s32.totalorder %v616_v12, 1  ;;  %v4642_v27 = vmov 0  ;;  %v4645_v41 = vmov 0  ;;  %v829_v42 = vrot.slane %v813_v19, %v3839_v16 }
  0x7c   :  { %v401_v48 = vpop.permute.xlu1 %400  ;;  %3452 = vmatpush1.msk.msra.mxu0 %vm4585_vm9, %v81_v43  ;;  %3455 = vmatpush1.msk.msra.mxu1 %vm4585_vm9, %v83_v44  ;;  %v399_v49 = vpop.permute.xlu0 %398  ;;  %v4641_v25 = vsel %vm3991_vm3, 4294967295, %v4640_v25 }
  0x7d   :  { %3453 = vmatmul.mubr.msk.f32.vlgmr.msra.gmra.mrb[0].mxu0 %vm4584_vm10, %v85_v45  ;;  %3456 = vmatmul.mubr.msk.f32.vlgmr.msra.gmra.mrb[0].mxu1 %vm4584_vm10, %v85_v45  ;;  %v409_v53 = vsel %vm4582_vm11, %v399_v49, %v401_v48  ;;  %v817_v45 = vrot.slane %v813_v19, %v3841_v17  ;;  %v4668_v19 = vmov 0 }
  0x7e   :  { %v433_v54 = vsel %vm3904_vm13, %v409_v53, 0.0  ;;  %3457 = vmatprep.subr.msk.mxu0 %vm4585_vm9, %v3746_v3  ;;  %3460 = vmatprep.subr.msk.mxu1 %vm4585_vm9, %v3742_v2 }
  0x7f   :  { %3458 = vmatpush1.msk.msra.mxu0 %vm4585_vm9, %v3734_v1  ;;  %3461 = vmatpush1.msk.msra.mxu1 %vm4585_vm9, %v3729_v0  ;;  %v3450_v1 = vld [vmem:[%s4577_s1 + $0x10] sm:$0xf] }
  0x80   :  { %v405_v58 = vpop.permute.xlu1 %404  ;;  %v403_v60 = vpop.permute.xlu0 %402  ;;  %3464 = vmatprep.subr.msk.mxu0 %vm4585_vm9, %v433_v54  ;;  %320 = vmatprep.mubr.f32.mxu0 %v3685_v5  ;;  %v4656_v54 = vmov 0 }
  0x81   :  { %v410_v61 = vsel %vm4582_vm11, %v405_v58, %v399_v49  ;;  %v407_v62 = vsel %vm4582_vm11, %v403_v60, %v405_v58  ;;  %v408_v63 = vsel %vm4582_vm11, %v401_v48, %v403_v60  ;;  %391 = vmatprep.mubr.f32.mxu1 %v3685_v5  ;;  %vm3984_vm11 = vcmp.eq.s32.totalorder %v628_v9, 1 }
  0x82   :  { %v435_v0 = vsel %vm3931_vm14, %v407_v62, 0.0  ;;  %v432_v2 = vsel %vm3938_vm15, %v410_v61, 0.0  ;;  %v434_v3 = vsel %vm3942_vm0, %v408_v63, 0.0  ;;  %v4639_v23 = vsel %vm3984_vm11, 4294967295, %v4638_v23  ;;  %v3470_v63 = vld [vmem:[%s4577_s1 + $0x8] sm:$0xf] }
  0x83   :  { %3467 = vmatprep.subr.msk.mxu1 %vm4585_vm9, %v435_v0  ;;  %vm4017_vm0 = vcmp.eq.s32.totalorder %v821_v24, 1  ;;  %v1022_v9 = vrot.slane %v1014_v8, %v3837_v15 }
  0x84   :  { %v602_v10 = vpop.permute.xlu1 %601  ;;  %v600_v11 = vpop.permute.xlu0 %599  ;;  %v4646_v41 = vsel %vm4017_vm0, 4294967295, %v4645_v41 }
  0x85   :  { %3459 = vmatmul.mubr.msk.f32.vlgmr.msra.gmra.mrb[0].mxu0 %vm4584_vm10, %v3450_v1  ;;  %3462 = vmatmul.mubr.msk.f32.vlgmr.msra.gmra.mrb[0].mxu1 %vm4584_vm10, %v3450_v1  ;;  %v610_v21 = vsel %vm4588_vm2, %v600_v11, %v602_v10  ;;  %vm3995_vm10 = vcmp.eq.s32.totalorder %v624_v14, 1  ;;  %v1026_v14 = vrot.slane %v1014_v8, %v3843_v18  ;;  %vm4088_vm15 = vcmp.eq.s32.totalorder %v1022_v9, 1 }
  0x86   :  { %3465 = vmatpush1.msk.msra.mxu0 %vm4585_vm9, %v432_v2  ;;  %3468 = vmatpush1.msk.msra.mxu1 %vm4585_vm9, %v434_v3  ;;  %v634_v22 = vsel %vm3966_vm12, %v610_v21, 0.0  ;;  %v4643_v27 = vsel %vm3995_vm10, 4294967295, %v4642_v27  ;;  %vm4644_vm12 = vcmask 1043456   ;;  %v1030_v3 = vrot.slane %v1014_v8, %v3839_v16 }
  0x87   :  { %3471 = vmatprep.subr.msk.mxu0 %vm4585_vm9, %v634_v22  ;;  %517 = vmatprep.mubr.f32.mxu0 %v3685_v5 }
  0x88   :  { %v606_v26 = vpop.permute.xlu1 %605  ;;  %v604_v28 = vpop.permute.xlu0 %603  ;;  %588 = vmatprep.mubr.f32.mxu1 %v3685_v5 }
  0x89   :  { %v611_v29 = vsel %vm4588_vm2, %v606_v26, %v600_v11  ;;  %v608_v35 = vsel %vm4588_vm2, %v604_v28, %v606_v26  ;;  %v609_v36 = vsel %vm4588_vm2, %v602_v10, %v604_v28  ;;  %vm4647_vm2 = vcmask 31744  }
  0x8a   :  { %v636_v37 = vsel %vm3984_vm11, %v608_v35, 0.0  ;;  %v633_v39 = vsel %vm3991_vm3, %v611_v29, 0.0  ;;  %v635_v40 = vsel %vm3995_vm10, %v609_v36, 0.0  ;;  %vm4648_vm9 = vmmov %vm4647_vm2  ;;  %vm4649_vm10 = vcmp.lt.s32.totalorder %v3846_v20, 1 }
  0x8b   :  { %3474 = vmatprep.subr.msk.mxu1 %vm4644_vm12, %v636_v37  ;;  %vm4650_vm11 = vmmov %vm4644_vm12  ;;  %vm4033_vm3 = vcmp.eq.s32.totalorder %v829_v42, 1  ;;  %v1018_v11 = vrot.slane %v1014_v8, %v3841_v17  ;;  %v4674_v26 = vmov 0  ;;  %v4684_v8 = vmov 0 }
  0x8c   :  { %v803_v43 = vpop.permute.xlu1 %802  ;;  %v801_v44 = vpop.permute.xlu0 %800  ;;  %v4652_v51 = vsel %vm4033_vm3, 4294967295, %v4651_v51  ;;  %vm4653_vm14 = vmmov %vm4650_vm11 }
  0x8d   :  { %3466 = vmatmul.mubr.msk.f32.vlgmr.msra.gmra.mrb[0].mxu0 %vm4647_vm2, %v3463_v38  ;;  %3469 = vmatmul.mubr.msk.f32.vlgmr.msra.gmra.mrb[0].mxu1 %vm4648_vm9, %v3463_v38  ;;  %v811_v48 = vsel %vm4649_vm10, %v801_v44, %v803_v43  ;;  %vm4039_vm9 = vcmp.eq.s32.totalorder %v817_v45, 1  ;;  %vm4043_vm10 = vcmp.eq.s32.totalorder %v825_v47, 1 }
  0x8e   :  { %3472 = vmatpush1.msk.msra.mxu0 %vm4644_vm12, %v633_v39  ;;  %3475 = vmatpush1.msk.msra.mxu1 %vm4650_vm11, %v635_v40  ;;  %v835_v49 = vsel %vm4017_vm0, %v811_v48, 0.0  ;;  %v4655_v52 = vsel %vm4039_vm9, 4294967295, %v4654_v52  ;;  %v4657_v54 = vsel %vm4043_vm10, 4294967295, %v4656_v54  ;;  %vm4658_vm11 = vcmp.lt.s32.totalorder %v3846_v20, 1  ;;  %v3477_v40 = vld [vmem:[%s4577_s1 + $0xc] sm:$0xf] }
  0x8f   :  { %3478 = vmatprep.subr.msk.mxu0 %vm4653_vm14, %v835_v49  ;;  %718 = vmatprep.mubr.f32.mxu0 %v3685_v5  ;;  %vm4659_vm14 = vmmov %vm4658_vm11  ;;  %vm4062_vm12 = vcmp.ne.s32.totalorder %v27_v50, 0  ;;  %vm4084_vm0 = vcmp.eq.s32.totalorder %v1030_v3, 1 }
  0x90   :  { %v807_v53 = vpop.permute.xlu1 %806  ;;  %v805_v56 = vpop.permute.xlu0 %804  ;;  %789 = vmatprep.mubr.f32.mxu1 %v3685_v5  ;;  %vm4660_vm2 = vmmov %vm4658_vm11  ;;  %v4669_v19 = vsel %vm4084_vm0, 4294967295, %v4668_v19 }
  0x91   :  { %v812_v58 = vsel %vm4658_vm11, %v807_v53, %v801_v44  ;;  %v809_v60 = vsel %vm4659_vm14, %v805_v56, %v807_v53  ;;  %v810_v61 = vsel %vm4660_vm2, %v803_v43, %v805_v56  ;;  %vm4663_vm11 = vcmask 1043456  }
  0x92   :  { %v837_v62 = vsel %vm4033_vm3, %v809_v60, 0.0  ;;  %v834_v1 = vsel %vm4039_vm9, %v812_v58, 0.0  ;;  %v836_v2 = vsel %vm4043_vm10, %v810_v61, 0.0  ;;  %vm4664_vm14 = vcmask 31744  }
  0x93   :  { %3481 = vmatprep.subr.msk.mxu1 %vm4663_vm11, %v837_v62  ;;  %vm4665_vm2 = vmmov %vm4664_vm14  ;;  %vm4598_vm3 = vcmp.lt.s32.totalorder %v3846_v20, 127  ;;  %vm4666_vm10 = vcmask 1043456   ;;  %v4680_v53 = vmov 0  ;;  %v4682_v56 = vmov 0 }
  0x94   :  { %v1004_v10 = vpop.permute.xlu1 %1003  ;;  %v1002_v12 = vpop.permute.xlu0 %1001  ;;  %vm35_vm11 = vmand %vm4062_vm12, %vm3829_vm1  ;;  %vm4100_vm1 = vcmp.eq.s32.totalorder %v1026_v14, 1  ;;  %v4686_v61 = vmov 0 }
  0x95   :  { %3473 = vmatmul.mubr.msk.f32.vlgmr.msra.gmra.mrb[0].mxu0 %vm4664_vm14, %v3470_v63  ;;  %3476 = vmatmul.mubr.msk.f32.vlgmr.msra.gmra.mrb[0].mxu1 %vm4665_vm2, %v3470_v63  ;;  %vm4667_vm9 = vmmov %vm4666_vm10  ;;  %vm4094_vm14 = vcmp.eq.s32.totalorder %v1018_v11, 1  ;;  %v1012_v22 = vsel %vm4598_vm3, %v1002_v12, %v1004_v10  ;;  %v4675_v26 = vsel %vm4100_vm1, 4294967295, %v4674_v26  ;;  %v1215_v29 = vsel %vm35_vm11, 1, %v3684_v4  ;;  %v3484_v11 = vld [vmem:[%s4577_s1 + $0x14] sm:$0xf] }
  0x96   :  { %3479 = vmatpush1.msk.msra.mxu0 %vm4666_vm10, %v834_v1  ;;  %3482 = vmatpush1.msk.msra.mxu1 %vm4667_vm9, %v836_v2  ;;  %v4673_v13 = vsel %vm4094_vm14, 4294967295, %v4672_v13  ;;  %v1035_v42 = vsel %vm4094_vm14, %v1012_v22, 0.0  ;;  %vm4676_vm10 = vmmov %vm4667_vm9  ;;  %v1231_v44 = vrot.slane %v1215_v29, %v3839_v16  ;;  %v1223_v45 = vrot.slane %v1215_v29, %v3837_v15 }
  0x97   :  { %919 = vmatprep.mubr.f32.mxu0 %v3685_v5  ;;  %990 = vmatprep.mubr.f32.mxu1 %v3685_v5  ;;  %v1219_v48 = vrot.slane %v1215_v29, %v3841_v17  ;;  %v1227_v50 = vrot.slane %v1215_v29, %v3843_v18  ;;  %vm4677_vm11 = vmmov %vm4665_vm2  ;;  %v1416_v63 = vsel %vm4062_vm12, 1, %v3684_v4 }
  0x98   :  { %v1008_v24 = vpop.permute.xlu1 %1007  ;;  %v1006_v28 = vpop.permute.xlu0 %1005  ;;  %vm4137_vm14 = vcmp.eq.s32.totalorder %v1223_v45, 1  ;;  %v1432_v22 = vrot.slane %v1416_v63, %v3839_v16  ;;  %v1420_v29 = vrot.slane %v1416_v63, %v3841_v17 }
  0x99   :  { %v1013_v35 = vsel %vm4598_vm3, %v1008_v24, %v1002_v12  ;;  %v1010_v36 = vsel %vm4598_vm3, %v1006_v28, %v1008_v24  ;;  %v1011_v37 = vsel %vm4598_vm3, %v1004_v10, %v1006_v28  ;;  %vm4601_vm3 = vcmp.lt.s32.totalorder %v3846_v20, 113 }
  0x9a   :  { %v1038_v38 = vsel %vm4084_vm0, %v1013_v35, 0.0  ;;  %v1036_v39 = vsel %vm4088_vm15, %v1011_v37, 0.0  ;;  %v1037_v43 = vsel %vm4100_vm1, %v1010_v36, 0.0  ;;  %vm4678_vm1 = vmmov %vm4667_vm9  ;;  %v4683_v56 = vsel %vm4137_vm14, 4294967295, %v4682_v56 }
  0x9b   :  { %3488 = vmatprep.subr.msk.mxu1 %vm4667_vm9, %v1038_v38  ;;  %3485 = vmatprep.subr.msk.mxu0 %vm4676_vm10, %v1036_v39  ;;  %vm4679_vm9 = vmmov %vm4678_vm1  ;;  %vm4133_vm10 = vcmp.eq.s32.totalorder %v1231_v44, 1  ;;  %v1424_v24 = vrot.slane %v1416_v63, %v3837_v15  ;;  %v1428_v36 = vrot.slane %v1416_v63, %v3843_v18 }
  0x9c   :  { %v1205_v47 = vpop.permute.xlu1 %1204  ;;  %v1203_v49 = vpop.permute.xlu0 %1202  ;;  %v4681_v53 = vsel %vm4133_vm10, 4294967295, %v4680_v53 }
  0x9d   :  { %3480 = vmatmul.mubr.msk.f32.vlgmr.msra.gmra.mrb[0].mxu0 %vm4665_vm2, %v3477_v40  ;;  %3483 = vmatmul.mubr.msk.f32.vlgmr.msra.gmra.mrb[0].mxu1 %vm4677_vm11, %v3477_v40  ;;  %vm4143_vm2 = vcmp.eq.s32.totalorder %v1219_v48, 1  ;;  %v1213_v58 = vsel %vm4601_vm3, %v1203_v49, %v1205_v47  ;;  %vm4688_vm11 = vmmov %vm4679_vm9  ;;  %vm4192_vm0 = vcmp.eq.s32.totalorder %v1424_v24, 1  ;;  %v4698_v40 = vmov 0 }
  0x9e   :  { %3486 = vmatpush1.msk.msra.mxu0 %vm4678_vm1, %v1035_v42  ;;  %3489 = vmatpush1.msk.msra.mxu1 %vm4679_vm9, %v1037_v43  ;;  %v4685_v8 = vsel %vm4143_vm2, 4294967295, %v4684_v8  ;;  %vm4149_vm1 = vcmp.eq.s32.totalorder %v1227_v50, 1  ;;  %v1236_v12 = vsel %vm4143_vm2, %v1213_v58, 0.0  ;;  %v3491_v50 = vld [vmem:[%s4577_s1 + $0x18] sm:$0xf] }
  0x9f   :  { %1120 = vmatprep.mubr.f32.mxu0 %v3685_v5  ;;  %1191 = vmatprep.mubr.f32.mxu1 %v3685_v5  ;;  %v4687_v61 = vsel %vm4149_vm1, 4294967295, %v4686_v61 }
  0xa0   :  { %v1209_v60 = vpop.permute.xlu1 %1208  ;;  %v1207_v62 = vpop.permute.xlu0 %1206 }
  0xa1   :  { %v1214_v1 = vsel %vm4601_vm3, %v1209_v60, %v1203_v49  ;;  %v1211_v2 = vsel %vm4601_vm3, %v1207_v62, %v1209_v60  ;;  %v1212_v3 = vsel %vm4601_vm3, %v1205_v47, %v1207_v62  ;;  %vm4689_vm3 = vcmask 31744  }
  0xa2   :  { %v1239_v9 = vsel %vm4133_vm10, %v1214_v1, 0.0  ;;  %v1237_v10 = vsel %vm4137_vm14, %v1212_v3, 0.0  ;;  %v1238_v14 = vsel %vm4149_vm1, %v1211_v2, 0.0  ;;  %vm4690_vm2 = vmmov %vm4689_vm3  ;;  %vm4607_vm1 = vcmp.lt.s32.totalorder %v3846_v20, 112 }
  0xa3   :  { %3495 = vmatprep.subr.msk.mxu1 %vm4688_vm11, %v1239_v9  ;;  %3492 = vmatprep.subr.msk.mxu0 %vm4679_vm9, %v1237_v10  ;;  %vm36_vm11 = vmand %vm4062_vm12, %vm3858_vm4  ;;  %vm4188_vm14 = vcmp.eq.s32.totalorder %v1432_v22, 1  ;;  %vm4204_vm4 = vcmp.eq.s32.totalorder %v1428_v36, 1  ;;  %v4711_v10 = vmov 0 }
  0xa4   :  { %v1406_v28 = vpop.permute.xlu1 %1405  ;;  %v1404_v35 = vpop.permute.xlu0 %1403  ;;  %vm4691_vm10 = vmmov %vm4679_vm9  ;;  %v4699_v40 = vsel %vm4204_vm4, 4294967295, %v4698_v40  ;;  %v1617_v43 = vsel %vm36_vm11, 1, %v3684_v4 }
  0xa5   :  { %3487 = vmatmul.mubr.msk.f32.vlgmr.msra.gmra.mrb[0].mxu0 %vm4689_vm3, %v3484_v11  ;;  %3490 = vmatmul.mubr.msk.f32.vlgmr.msra.gmra.mrb[0].mxu1 %vm4690_vm2, %v3484_v11  ;;  %vm4198_vm3 = vcmp.eq.s32.totalorder %v1420_v29, 1  ;;  %v1414_v0 = vsel %vm4607_vm1, %v1404_v35, %v1406_v28  ;;  %vm4700_vm12 = vmmov %vm4679_vm9  ;;  %v1633_v60 = vrot.slane %v1617_v43, %v3839_v16  ;;  %v1625_v62 = vrot.slane %v1617_v43, %v3837_v15  ;;  %v3498_v29 = vld [vmem:[%s4577_s1 + $0x1c] sm:$0xf] }
  0xa6   :  { %3493 = vmatpush1.msk.msra.mxu0 %vm4679_vm9, %v1236_v12  ;;  %3496 = vmatpush1.msk.msra.mxu1 %vm4691_vm10, %v1238_v14  ;;  %v4697_v30 = vsel %vm4198_vm3, 4294967295, %v4696_v30  ;;  %v1437_v4 = vsel %vm4198_vm3, %v1414_v0, 0.0  ;;  %vm4701_vm10 = vmmov %vm4679_vm9  ;;  %v1621_v1 = vrot.slane %v1617_v43, %v3841_v17  ;;  %v1629_v3 = vrot.slane %v1617_v43, %v3843_v18  ;;  %v3505_v0 = vld [vmem:[%s4577_s1 + $0x20] sm:$0xf] }
  0xa7   :  { %1321 = vmatprep.mubr.f32.mxu0 %v3685_v5  ;;  %1392 = vmatprep.mubr.f32.mxu1 %v3685_v5  ;;  %vm4702_vm11 = vmmov %vm4690_vm2  ;;  %vm4609_vm9 = vcmp.lt.s32.totalorder %v3846_v20, 111  ;;  %v4705_v16 = vmov 0  ;;  %v4707_v15 = vmov 0 }
  0xa8   :  { %v1410_v39 = vpop.permute.xlu1 %1409  ;;  %v1408_v42 = vpop.permute.xlu0 %1407 }
  0xa9   :  { %v1415_v44 = vsel %vm4607_vm1, %v1410_v39, %v1404_v35  ;;  %v1412_v45 = vsel %vm4607_vm1, %v1408_v42, %v1410_v39  ;;  %v1413_v47 = vsel %vm4607_vm1, %v1406_v28, %v1408_v42  ;;  %vm4703_vm1 = vmmov %vm4701_vm10 }
  0xaa   :  { %v1440_v48 = vsel %vm4188_vm14, %v1415_v44, 0.0  ;;  %v1438_v49 = vsel %vm4192_vm0, %v1413_v47, 0.0  ;;  %v1439_v58 = vsel %vm4204_vm4, %v1412_v45, 0.0  ;;  %vm4241_vm4 = vcmp.eq.s32.totalorder %v1625_v62, 1 }
  0xab   :  { %3502 = vmatprep.subr.msk.mxu1 %vm4700_vm12, %v1440_v48  ;;  %3499 = vmatprep.subr.msk.mxu0 %vm4701_vm10, %v1438_v49  ;;  %vm4704_vm12 = vmmov %vm4703_vm1  ;;  %vm4237_vm10 = vcmp.eq.s32.totalorder %v1633_v60, 1  ;;  %v4708_v15 = vsel %vm4241_vm4, 4294967295, %v4707_v15 }
  0xac   :  { %v1607_v63 = vpop.permute.xlu1 %1606  ;;  %v1605_v2 = vpop.permute.xlu0 %1604  ;;  %v4706_v16 = vsel %vm4237_vm10, 4294967295, %v4705_v16 }
  0xad   :  { %3494 = vmatmul.mubr.msk.f32.vlgmr.msra.gmra.mrb[0].mxu0 %vm4690_vm2, %v3491_v50  ;;  %3497 = vmatmul.mubr.msk.f32.vlgmr.msra.gmra.mrb[0].mxu1 %vm4702_vm11, %v3491_v50  ;;  %vm4247_vm2 = vcmp.eq.s32.totalorder %v1621_v1, 1  ;;  %v1615_v18 = vsel %vm4609_vm9, %v1605_v2, %v1607_v63  ;;  %vm4713_vm11 = vmmov %vm4704_vm12 }
  0xae   :  { %3500 = vmatpush1.msk.msra.mxu0 %vm4703_vm1, %v1437_v4  ;;  %3503 = vmatpush1.msk.msra.mxu1 %vm4704_vm12, %v1439_v58  ;;  %vm4253_vm1 = vcmp.eq.s32.totalorder %v1629_v3, 1  ;;  %v1638_v35 = vsel %vm4247_vm2, %v1615_v18, 0.0  ;;  %vm4714_vm12 = vmmov %vm4713_vm11 }
  0xaf   :  { %1522 = vmatprep.mubr.f32.mxu0 %v3685_v5  ;;  %1593 = vmatprep.mubr.f32.mxu1 %v3685_v5  ;;  %v4712_v10 = vsel %vm4253_vm1, 4294967295, %v4711_v10  ;;  %vm4717_vm3 = vmmov %vm4713_vm11 }
  0xb0   :  { %v1611_v9 = vpop.permute.xlu1 %1610  ;;  %v1609_v11 = vpop.permute.xlu0 %1608 }
  0xb1   :  { %v1616_v12 = vsel %vm4609_vm9, %v1611_v9, %v1605_v2  ;;  %v1613_v14 = vsel %vm4609_vm9, %v1609_v11, %v1611_v9  ;;  %v1614_v22 = vsel %vm4609_vm9, %v1607_v63, %v1609_v11  ;;  %vm4715_vm9 = vcmask 31744  }
  0xb2   :  { %v1641_v24 = vsel %vm4237_vm10, %v1616_v12, 0.0  ;;  %v1639_v28 = vsel %vm4241_vm4, %v1614_v22, 0.0  ;;  %v1640_v36 = vsel %vm4253_vm1, %v1613_v14, 0.0  ;;  %vm4716_vm10 = vmmov %vm4715_vm9  ;;  %v3694_v9 = vmov 2  }
  0xb3   :  { %3509 = vmatprep.subr.msk.mxu1 %vm4713_vm11, %v1641_v24  ;;  %3506 = vmatprep.subr.msk.mxu0 %vm4714_vm12, %v1639_v28  ;;  %vm4718_vm4 = vmmov %vm4717_vm3 }
  0xb4   :  { %vm4719_vm1 = vmmov %vm4715_vm9  ;;  %3653 = vset.pattern.permute.xlu1 %v3694_v9  ;;  %3654 = vset.pattern.permute.xlu0 %v3694_v9 }
  0xb5   :  { %3501 = vmatmul.mubr.msk.f32.vlgmr.msra.gmra.mrb[0].mxu0 %vm4715_vm9, %v3498_v29  ;;  %3504 = vmatmul.mubr.msk.f32.vlgmr.msra.gmra.mrb[0].mxu1 %vm4716_vm10, %v3498_v29  ;;  %vm4720_vm11 = vmmov %vm4719_vm1 }
  0xb6   :  { %3507 = vmatpush1.msk.msra.mxu0 %vm4717_vm3, %v1638_v35  ;;  %3510 = vmatpush1.msk.msra.mxu1 %vm4718_vm4, %v1640_v36  ;;  %v1848_v36 = vld [vmem:[%s4578_s2] sm:$0xf] }
  0xb7   :  { %1723 = vmatprep.mubr.f32.mxu0 %v3685_v5  ;;  %1794 = vmatprep.mubr.f32.mxu1 %v3685_v5 }
  0xbd   :  { %3508 = vmatmul.mubr.msk.f32.vlgmr.msra.gmra.mrb[0].mxu0 %vm4719_vm1, %v3505_v0  ;;  %3511 = vmatmul.mubr.msk.f32.vlgmr.msra.gmra.mrb[0].mxu1 %vm4720_vm11, %v3505_v0  ;;  %vm4721_vm1 = vcmp.lt.s32.totalorder %v3846_v20, 17 }
  0xbe   :  { %1928 = vmatprep.mubr.f32.mxu0 %v3685_v5  ;;  %1999 = vmatprep.mubr.f32.mxu1 %v3685_v5  ;;  %vm4722_vm11 = vmmov %vm4721_vm1 }
  0xc1   :  { %v1808_v39 = vpop.permute.xlu0 %1807  ;;  %v1820_v42 = vpop.permute.xlu1 %1819 }
 0x190   :  { %v1725_v43 = vpop.f32.mrb[0].mxu0  ;;  %v1796_v44 = vpop.f32.mrb[0].mxu1 }
 0x191   :  { %v1810_v45 = vadd.f32 %v1808_v39, %v1725_v43  ;;  %v1812_v47 = vadd.f32 %v1808_v39, %v1796_v44  ;;  %v1727_v48 = vpop.f32.mrb[1].mxu0  ;;  %v1798_v49 = vpop.f32.mrb[1].mxu1 }
 0x192   :  { %v1811_v50 = vadd.f32 %v1808_v39, %v1727_v48  ;;  %v1813_v4 = vadd.f32 %v1808_v39, %v1798_v49 }
 0x193   :  { %vm1814_vm3 = vcmp.gt.f32.partialorder %v1810_v45, 0.0  ;;  %v1822_v58 = vmul.f32 %v1820_v42, %v1810_v45  ;;  %v1824_v62 = vmul.f32 %v1820_v42, %v1812_v47  ;;  %vm1816_vm9 = vcmp.gt.f32.partialorder %v1812_v47, 0.0 }
 0x194   :  { %vm1815_vm4 = vcmp.gt.f32.partialorder %v1811_v50, 0.0  ;;  %v1823_v60 = vmul.f32 %v1820_v42, %v1811_v50  ;;  %v1825_v1 = vmul.f32 %v1820_v42, %v1813_v4  ;;  %vm1817_vm10 = vcmp.gt.f32.partialorder %v1813_v4, 0.0 }
 0x195   :  { %v4289_v63 = vsel %vm1814_vm3, %v1810_v45, %v1822_v58  ;;  %v1828_v3 = vsel %vm1816_vm9, %v1812_v47, %v1824_v62  ;;  %vm4723_vm3 = vmmov %vm4721_vm1  ;;  %v3512_v47 = vld [vmem:[%s4578_s2 + $0x10] sm:$0xf] }
 0x196   :  { %v1827_v2 = vsel %vm1815_vm4, %v1811_v50, %v1823_v60  ;;  %1832 = vrot.lane.b32.xlu1 %v4289_v63, %s3683_s22  ;;  %v1829_v18 = vsel %vm1817_vm10, %v1813_v4, %v1825_v1  ;;  %vm4724_vm4 = vmmov %vm4721_vm1  ;;  %vm4727_vm10 = vcmask 31744  }
 0x197   :  { %1834 = vrot.lane.b32.xlu0 %v1827_v2, %s3683_s22 }
 0x19a   :  { %1836 = vrot.lane.b32.xlu1 %v1828_v3, %s3683_s22 }
 0x19b   :  { %1838 = vrot.lane.b32.xlu0 %v1829_v18, %s3683_s22 }
 0x19e   :  { %2163 = vrot.lane.b32.xlu1 %v4289_v63, %s3686_s23 }
 0x19f   :  { %2165 = vrot.lane.b32.xlu0 %v1827_v2, %s3686_s23 }
 0x1a2   :  { %2167 = vrot.lane.b32.xlu1 %v1828_v3, %s3686_s23 }
 0x1a3   :  { %2169 = vrot.lane.b32.xlu0 %v1829_v18, %s3686_s23 }
 0x1a6   :  { %2342 = vrot.lane.b32.xlu1 %v4289_v63, %s3687_s24 }
 0x1a7   :  { %2344 = vrot.lane.b32.xlu0 %v1827_v2, %s3687_s24 }
 0x1aa   :  { %2346 = vrot.lane.b32.xlu1 %v1828_v3, %s3687_s24 }
 0x1ab   :  { %2348 = vrot.lane.b32.xlu0 %v1829_v18, %s3687_s24 }
 0x1ae   :  { %2521 = vrot.lane.b32.xlu1 %v4289_v63, %s3688_s25 }
 0x1af   :  { %2523 = vrot.lane.b32.xlu0 %v1827_v2, %s3688_s25 }
 0x1b2   :  { %2525 = vrot.lane.b32.xlu1 %v1828_v3, %s3688_s25 }
 0x1b3   :  { %2527 = vrot.lane.b32.xlu0 %v1829_v18, %s3688_s25 }
 0x1b6   :  { %2700 = vrot.lane.b32.xlu1 %v4289_v63, %s3689_s26 }
 0x1b7   :  { %2702 = vrot.lane.b32.xlu0 %v1827_v2, %s3689_s26 }
 0x1ba   :  { %2704 = vrot.lane.b32.xlu1 %v1828_v3, %s3689_s26 }
 0x1bb   :  { %2706 = vrot.lane.b32.xlu0 %v1829_v18, %s3689_s26 }
 0x1be   :  { %2879 = vrot.lane.b32.xlu1 %v4289_v63, %s3690_s27 }
 0x1bf   :  { %2881 = vrot.lane.b32.xlu0 %v1827_v2, %s3690_s27 }
 0x1c2   :  { %2883 = vrot.lane.b32.xlu1 %v1828_v3, %s3690_s27 }
 0x1c3   :  { %2885 = vrot.lane.b32.xlu0 %v1829_v18, %s3690_s27 }
 0x1c6   :  { %3058 = vrot.lane.b32.xlu1 %v4289_v63, %s3691_s28 }
 0x1c7   :  { %3060 = vrot.lane.b32.xlu0 %v1827_v2, %s3691_s28 }
 0x1ca   :  { %3062 = vrot.lane.b32.xlu1 %v1828_v3, %s3691_s28 }
 0x1cb   :  { %3064 = vrot.lane.b32.xlu0 %v1829_v18, %s3691_s28 }
 0x1ce   :  { %3237 = vrot.lane.b32.xlu1 %v4289_v63, %s3692_s29 }
 0x1cf   :  { %3239 = vrot.lane.b32.xlu0 %v1827_v2, %s3692_s29 }
 0x1d2   :  { %3241 = vrot.lane.b32.xlu1 %v1828_v3, %s3692_s29 }
 0x1d3   :  { %3243 = vrot.lane.b32.xlu0 %v1829_v18, %s3692_s29 }
 0x1d6   :  { %3417 = vperm.xlu1 %3653, %v3814_v6  }
 0x208   :  { %v1833_v11 = vpop.permute.xlu1 %1832 }
 0x209   :  { %v1835_v12 = vpop.permute.xlu0 %1834 }
 0x20a   :  { %v1842_v14 = vsel %vm4721_vm1, %v1833_v11, %v1835_v12 }
 0x20b   :  { %v1845_v22 = vsel %vm3862_vm5, %v1842_v14, 0.0  ;;  %vm4725_vm5 = vmmov %vm4714_vm12 }
 0x20c   :  { %3513 = vmatprep.subr.msk.mxu0 %vm4714_vm12, %v1845_v22  ;;  %v1837_v24 = vpop.permute.xlu1 %1836  ;;  %vm4726_vm9 = vmmov %vm4725_vm5  ;;  %vm4729_vm12 = vcmp.lt.s32.totalorder %v3846_v20, 16 }
 0x20d   :  { %v1841_v28 = vsel %vm4722_vm11, %v1835_v12, %v1837_v24  ;;  %v1839_v29 = vpop.permute.xlu0 %1838  ;;  %vm4728_vm1 = vmmov %vm4725_vm5 }
 0x20e   :  { %v1840_v35 = vsel %vm4723_vm3, %v1837_v24, %v1839_v29  ;;  %v1843_v6 = vsel %vm4724_vm4, %v1839_v29, %v1833_v11  ;;  %v1846_v39 = vsel %vm3874_vm8, %v1841_v28, 0.0  ;;  %vm4731_vm11 = vmmov %vm4727_vm10 }
 0x20f   :  { %v1844_v31 = vsel %vm3870_vm7, %v1843_v6, 0.0  ;;  %v1847_v0 = vsel %vm3866_vm6, %v1840_v35, 0.0  ;;  %vm4730_vm7 = vmmov %vm4728_vm1 }
 0x210   :  { %3514 = vmatpush1.msk.msra.mxu0 %vm4725_vm5, %v1844_v31  ;;  %3516 = vmatprep.subr.msk.mxu1 %vm4726_vm9, %v1847_v0  ;;  %v2164_v42 = vpop.permute.xlu1 %2163  ;;  %vm4732_vm6 = vmmov %vm4728_vm1 }
 0x211   :  { %v2166_v43 = vpop.permute.xlu0 %2165  ;;  %3515 = vmatmul.mubr.msk.f32.vlgmr.msra.gmra.mrb[2].mxu0 %vm4727_vm10, %v1848_v36  ;;  %3517 = vmatpush1.msk.msra.mxu1 %vm4728_vm1, %v1846_v39  ;;  %vm4733_vm8 = vmmov %vm4728_vm1  ;;  %vm4739_vm10 = vnez %v4633_v57 }
 0x212   :  { %v2173_v33 = vsel %vm4729_vm12, %v2164_v42, %v2166_v43  ;;  %3519 = vmatprep.subr.msk.mxu0 %vm4730_vm7, %v1827_v2  ;;  %3518 = vmatmul.mubr.msk.f32.vlgmr.msra.gmra.mrb[2].mxu1 %vm4731_vm11, %v1848_v36  ;;  %vm4734_vm3 = vmmov %vm4728_vm1 }
 0x213   :  { %v2176_v32 = vsel %vm3904_vm13, %v2173_v33, 0.0  ;;  %3520 = vmatpush1.msk.msra.mxu0 %vm4732_vm6, %v4289_v63  ;;  %3522 = vmatprep.subr.msk.mxu1 %vm4733_vm8, %v1829_v18  ;;  %vm4735_vm4 = vmmov %vm4728_vm1  ;;  %vm4740_vm1 = vnez %v4631_v55  ;;  %vm4744_vm6 = vcmp.lt.s32.totalorder %v3846_v20, 15 }
 0x214   :  { %3523 = vmatpush1.msk.msra.mxu1 %vm4734_vm3, %v1828_v3  ;;  %3526 = vmatprep.subr.msk.mxu0 %vm4735_vm4, %v2176_v32  ;;  %v2168_v34 = vpop.permute.xlu1 %2167  ;;  %vm4736_vm5 = vmmov %vm4729_vm12  ;;  %vm4747_vm4 = vnez %v4637_v7  ;;  %v3525_v7 = vld [vmem:[%s4578_s2 + $0x4] sm:$0xf] }
 0x215   :  { %v2170_v44 = vpop.permute.xlu0 %2169  ;;  %2085 = vmatprep.mubr.f32.mxu0 %v3685_v5  ;;  %2156 = vmatprep.mubr.f32.mxu1 %v3685_v5  ;;  %vm4737_vm13 = vmmov %vm4736_vm5 }
 0x216   :  { %v2171_v45 = vsel %vm4736_vm5, %v2168_v34, %v2170_v44  ;;  %v2174_v46 = vsel %vm4737_vm13, %v2170_v44, %v2164_v42  ;;  %vm4738_vm9 = vmmov %vm4736_vm5 }
 0x217   :  { %v2172_v48 = vsel %vm4738_vm9, %v2166_v43, %v2168_v34  ;;  %v2175_v49 = vsel %vm4739_vm10, %v2174_v46, 0.0  ;;  %v2178_v50 = vsel %vm4740_vm1, %v2171_v45, 0.0  ;;  %vm4741_vm12 = vmmov %vm4734_vm3  ;;  %v3539_v43 = vld [vmem:[%s4578_s2 + $0xc] sm:$0xf] }
 0x218   :  { %3529 = vmatprep.subr.msk.mxu1 %vm4741_vm12, %v2178_v50  ;;  %v2343_v4 = vpop.permute.xlu1 %2342  ;;  %vm4742_vm7 = vmmov %vm4731_vm11  ;;  %vm4743_vm11 = vnez %v4635_v59  ;;  %vm4753_vm12 = vnez %v4641_v25 }
 0x219   :  { %v2345_v58 = vpop.permute.xlu0 %2344  ;;  %3521 = vmatmul.mubr.msk.f32.vlgmr.msra.gmra.mrb[2].mxu0 %vm4742_vm7, %v3512_v47  ;;  %v2177_v60 = vsel %vm4743_vm11, %v2172_v48, 0.0  ;;  %vm4745_vm8 = vmmov %vm4734_vm3 }
 0x21a   :  { %v2352_v62 = vsel %vm4744_vm6, %v2343_v4, %v2345_v58  ;;  %3527 = vmatpush1.msk.msra.mxu0 %vm4745_vm8, %v2175_v49  ;;  %vm4746_vm3 = vmmov %vm4742_vm7  ;;  %2260 = vmatprep.mubr.f32.mxu0 %v3685_v5  ;;  %vm4754_vm7 = vnez %v4639_v23  ;;  %v3546_v49 = vld [vmem:[%s4578_s2 + $0x14] sm:$0xf] }
 0x21b   :  { %3524 = vmatmul.mubr.msk.f32.vlgmr.msra.gmra.mrb[2].mxu1 %vm4746_vm3, %v3512_v47  ;;  %v2355_v55 = vsel %vm4747_vm4, %v2352_v62, 0.0  ;;  %vm4748_vm5 = vmmov %vm4745_vm8  ;;  %vm4757_vm8 = vnez %v4643_v27 }
 0x21c   :  { %3530 = vmatpush1.msk.msra.mxu1 %vm4748_vm5, %v2177_v60  ;;  %vm4749_vm13 = vmmov %vm4748_vm5  ;;  %v2347_v57 = vpop.permute.xlu1 %2346  ;;  %2331 = vmatprep.mubr.f32.mxu1 %v3685_v5 }
 0x21d   :  { %3533 = vmatprep.subr.msk.mxu0 %vm4749_vm13, %v2355_v55  ;;  %v2349_v59 = vpop.permute.xlu0 %2348  ;;  %vm4750_vm9 = vmmov %vm4744_vm6  ;;  %vm4761_vm13 = vnez %v4646_v41  ;;  %v3532_v41 = vld [vmem:[%s4578_s2 + $0x8] sm:$0xf] }
 0x21e   :  { %v2350_v63 = vsel %vm4750_vm9, %v2347_v57, %v2349_v59  ;;  %vm4751_vm10 = vmmov %vm4744_vm6 }
 0x21f   :  { %v2353_v1 = vsel %vm4751_vm10, %v2349_v59, %v2343_v4  ;;  %vm4752_vm1 = vmmov %vm4744_vm6  ;;  %v2357_v18 = vsel %vm4754_vm7, %v2350_v63, 0.0  ;;  %v3553_v63 = vld [vmem:[%s4578_s2 + $0x18] sm:$0xf] }
 0x220   :  { %v2351_v2 = vsel %vm4752_vm1, %v2345_v58, %v2347_v57  ;;  %v2354_v3 = vsel %vm4753_vm12, %v2353_v1, 0.0  ;;  %vm4755_vm11 = vmmov %vm4748_vm5  ;;  %v2522_v9 = vpop.permute.xlu1 %2521 }
 0x221   :  { %3536 = vmatprep.subr.msk.mxu1 %vm4755_vm11, %v2357_v18  ;;  %v2524_v11 = vpop.permute.xlu0 %2523  ;;  %vm4756_vm6 = vmmov %vm4746_vm3  ;;  %v2356_v12 = vsel %vm4757_vm8, %v2351_v2, 0.0  ;;  %vm4758_vm3 = vcmp.lt.s32.totalorder %v3846_v20, 1  ;;  %vm4767_vm11 = vnez %v4655_v52 }
 0x222   :  { %3528 = vmatmul.mubr.msk.f32.vlgmr.msra.gmra.mrb[2].mxu0 %vm4756_vm6, %v3525_v7  ;;  %v2531_v14 = vsel %vm4758_vm3, %v2522_v9, %v2524_v11  ;;  %vm4759_vm4 = vmmov %vm4748_vm5 }
 0x223   :  { %3534 = vmatpush1.msk.msra.mxu0 %vm4759_vm4, %v2354_v3  ;;  %vm4760_vm5 = vmmov %vm4756_vm6  ;;  %v2534_v23 = vsel %vm4761_vm13, %v2531_v14, 0.0  ;;  %2439 = vmatprep.mubr.f32.mxu0 %v3685_v5  ;;  %vm4768_vm6 = vnez %v4652_v51  ;;  %v3560_v14 = vld [vmem:[%s4578_s2 + $0x1c] sm:$0xf] }
 0x224   :  { %3531 = vmatmul.mubr.msk.f32.vlgmr.msra.gmra.mrb[2].mxu1 %vm4760_vm5, %v3525_v7  ;;  %vm4762_vm9 = vmmov %vm4759_vm4  ;;  %v2526_v25 = vpop.permute.xlu1 %2525 }
 0x225   :  { %3537 = vmatpush1.msk.msra.mxu1 %vm4762_vm9, %v2356_v12  ;;  %vm4763_vm10 = vmmov %vm4759_vm4  ;;  %2510 = vmatprep.mubr.f32.mxu1 %v3685_v5  ;;  %v2528_v27 = vpop.permute.xlu0 %2527 }
 0x226   :  { %3540 = vmatprep.subr.msk.mxu0 %vm4763_vm10, %v2534_v23  ;;  %vm4764_vm1 = vmmov %vm4758_vm3  ;;  %vm4775_vm10 = vcmp.lt.s32.totalorder %v3846_v20, 127 }
 0x227   :  { %v2529_v22 = vsel %vm4764_vm1, %v2526_v25, %v2528_v27  ;;  %vm4765_vm12 = vmmov %vm4764_vm1 }
 0x228   :  { %v2532_v24 = vsel %vm4765_vm12, %v2528_v27, %v2522_v9  ;;  %vm4766_vm7 = vmmov %vm4764_vm1  ;;  %v2536_v35 = vsel %vm4768_vm6, %v2529_v22, 0.0  ;;  %v2701_v6 = vpop.permute.xlu1 %2700 }
 0x229   :  { %v2530_v28 = vsel %vm4766_vm7, %v2524_v11, %v2526_v25  ;;  %v2533_v29 = vsel %vm4767_vm11, %v2532_v24, 0.0  ;;  %vm4769_vm8 = vmmov %vm4759_vm4  ;;  %v2703_v36 = vpop.permute.xlu0 %2702  ;;  %vm4771_vm4 = vnez %v4657_v54  ;;  %vm4779_vm11 = vnez %v4669_v19 }
 0x22a   :  { %3543 = vmatprep.subr.msk.mxu1 %vm4769_vm8, %v2536_v35  ;;  %vm4770_vm3 = vmmov %vm4760_vm5  ;;  %v2535_v31 = vsel %vm4771_vm4, %v2530_v28, 0.0  ;;  %vm4783_vm4 = vnez %v4675_v26 }
 0x22b   :  { %3535 = vmatmul.mubr.msk.f32.vlgmr.msra.gmra.mrb[2].mxu0 %vm4770_vm3, %v3532_v41  ;;  %vm4772_vm5 = vmmov %vm4769_vm8 }
 0x22c   :  { %3541 = vmatpush1.msk.msra.mxu0 %vm4772_vm5, %v2533_v29  ;;  %vm4773_vm13 = vmmov %vm4770_vm3  ;;  %2618 = vmatprep.mubr.f32.mxu0 %v3685_v5  ;;  %v2705_v52 = vpop.permute.xlu1 %2704 }
 0x22d   :  { %3538 = vmatmul.mubr.msk.f32.vlgmr.msra.gmra.mrb[2].mxu1 %vm4773_vm13, %v3532_v41  ;;  %vm4774_vm9 = vmmov %vm4772_vm5  ;;  %v2709_v51 = vsel %vm4775_vm10, %v2703_v36, %v2705_v52  ;;  %v2707_v0 = vpop.permute.xlu0 %2706 }
 0x22e   :  { %3544 = vmatpush1.msk.msra.mxu1 %vm4774_vm9, %v2535_v31  ;;  %2689 = vmatprep.mubr.f32.mxu1 %v3685_v5  ;;  %vm4776_vm1 = vmmov %vm4775_vm10  ;;  %v2713_v54 = vsel %vm4088_vm15, %v2709_v51, 0.0  ;;  %vm4782_vm15 = vnez %v4673_v13  ;;  %vm4786_vm10 = vcmp.lt.s32.totalorder %v3846_v20, 113 }
 0x22f   :  { %v2710_v39 = vsel %vm4776_vm1, %v2701_v6, %v2703_v36  ;;  %vm4777_vm12 = vmmov %vm4776_vm1  ;;  %v3657_v36 = vld [vmem:[%s4576_s0] sm:$0xff] }
 0x230   :  { %v2711_v42 = vsel %vm4777_vm12, %v2707_v0, %v2701_v6  ;;  %vm4778_vm7 = vmmov %vm4776_vm1  ;;  %v2880_v34 = vpop.permute.xlu1 %2879  ;;  %v2712_v21 = vsel %vm4782_vm15, %v2710_v39, 0.0  ;;  %vm4788_vm12 = vnez %v4683_v56 }
 0x231   :  { %v2708_v33 = vsel %vm4778_vm7, %v2705_v52, %v2707_v0  ;;  %v2715_v32 = vsel %vm4779_vm11, %v2711_v42, 0.0  ;;  %vm4780_vm6 = vmmov %vm4772_vm5  ;;  %v2882_v44 = vpop.permute.xlu0 %2881  ;;  %v3658_v52 = vld [vmem:[%s4576_s0 + $0x8] sm:$0xff] }
 0x232   :  { %3547 = vmatprep.subr.msk.mxu0 %vm4780_vm6, %v2713_v54  ;;  %vm4781_vm8 = vmmov %vm4772_vm5  ;;  %v2714_v45 = vsel %vm4783_vm4, %v2708_v33, 0.0  ;;  %vm4791_vm6 = vnez %v4681_v53 }
 0x233   :  { %3550 = vmatprep.subr.msk.mxu1 %vm4781_vm8, %v2715_v32  ;;  %3542 = vmatmul.mubr.msk.f32.vlgmr.msra.gmra.mrb[2].mxu0 %vm4770_vm3, %v3539_v43  ;;  %vm4784_vm13 = vmmov %vm4770_vm3  ;;  %vm4794_vm3 = vnez %v4685_v8 }
 0x234   :  { %3548 = vmatpush1.msk.msra.mxu0 %vm4772_vm5, %v2712_v21  ;;  %vm4785_vm9 = vmmov %vm4772_vm5  ;;  %2797 = vmatprep.mubr.f32.mxu0 %v3685_v5  ;;  %v2884_v19 = vpop.permute.xlu1 %2883 }
 0x235   :  { %3545 = vmatmul.mubr.msk.f32.vlgmr.msra.gmra.mrb[2].mxu1 %vm4784_vm13, %v3539_v43  ;;  %v2888_v13 = vsel %vm4786_vm10, %v2882_v44, %v2884_v19  ;;  %v2886_v46 = vpop.permute.xlu0 %2885  ;;  %vm4787_vm1 = vmmov %vm4786_vm10 }
 0x236   :  { %3551 = vmatpush1.msk.msra.mxu1 %vm4785_vm9, %v2714_v45  ;;  %2868 = vmatprep.mubr.f32.mxu1 %v3685_v5  ;;  %v2889_v47 = vsel %vm4787_vm1, %v2880_v34, %v2882_v44  ;;  %v2892_v26 = vsel %vm4788_vm12, %v2888_v13, 0.0  ;;  %vm4789_vm7 = vmmov %vm4787_vm1 }
 0x237   :  { %v2890_v48 = vsel %vm4789_vm7, %v2886_v46, %v2880_v34  ;;  %vm4790_vm11 = vmmov %vm4787_vm1  ;;  %v2891_v56 = vsel %vm4794_vm3, %v2889_v47, 0.0  ;;  %vm4800_vm1 = vcmp.lt.s32.totalorder %v3846_v20, 112  ;;  %vm4808_vm3 = vnez %v4699_v40 }
 0x238   :  { %v2887_v50 = vsel %vm4790_vm11, %v2884_v19, %v2886_v46  ;;  %v2894_v4 = vsel %vm4791_vm6, %v2890_v48, 0.0  ;;  %vm4792_vm8 = vmmov %vm4772_vm5  ;;  %v3059_v58 = vpop.permute.xlu1 %3058 }
 0x239   :  { %3554 = vmatprep.subr.msk.mxu0 %vm4792_vm8, %v2892_v26  ;;  %vm4793_vm15 = vmmov %vm4772_vm5  ;;  %v3061_v60 = vpop.permute.xlu0 %3060  ;;  %vm4796_vm5 = vnez %v4687_v61 }
 0x23a   :  { %3557 = vmatprep.subr.msk.mxu1 %vm4793_vm15, %v2894_v4  ;;  %vm4795_vm4 = vmmov %vm4784_vm13  ;;  %v2893_v62 = vsel %vm4796_vm5, %v2887_v50, 0.0 }
 0x23b   :  { %3549 = vmatmul.mubr.msk.f32.vlgmr.msra.gmra.mrb[2].mxu0 %vm4795_vm4, %v3546_v49  ;;  %vm4797_vm13 = vmmov %vm4792_vm8 }
 0x23c   :  { %3555 = vmatpush1.msk.msra.mxu0 %vm4797_vm13, %v2891_v56  ;;  %vm4798_vm9 = vmmov %vm4795_vm4  ;;  %2976 = vmatprep.mubr.f32.mxu0 %v3685_v5  ;;  %v3063_v53 = vpop.permute.xlu1 %3062 }
 0x23d   :  { %3552 = vmatmul.mubr.msk.f32.vlgmr.msra.gmra.mrb[2].mxu1 %vm4798_vm9, %v3546_v49  ;;  %vm4799_vm10 = vmmov %vm4792_vm8  ;;  %v3067_v8 = vsel %vm4800_vm1, %v3061_v60, %v3063_v53  ;;  %v3065_v55 = vpop.permute.xlu0 %3064 }
 0x23e   :  { %3558 = vmatpush1.msk.msra.mxu1 %vm4799_vm10, %v2893_v62  ;;  %3047 = vmatprep.mubr.f32.mxu1 %v3685_v5  ;;  %vm4801_vm12 = vmmov %vm4800_vm1  ;;  %v3071_v61 = vsel %vm4192_vm0, %v3067_v8, 0.0  ;;  %vm4806_vm0 = vnez %v4697_v30  ;;  %vm4814_vm10 = vnez %v4708_v15 }
 0x23f   :  { %v3068_v57 = vsel %vm4801_vm12, %v3059_v58, %v3061_v60  ;;  %vm4802_vm7 = vmmov %vm4800_vm1 }
 0x240   :  { %v3069_v59 = vsel %vm4802_vm7, %v3065_v55, %v3059_v58  ;;  %vm4803_vm11 = vmmov %vm4800_vm1  ;;  %v3238_v2 = vpop.permute.xlu1 %3237  ;;  %v3070_v38 = vsel %vm4806_vm0, %v3068_v57, 0.0  ;;  %vm4817_vm7 = vnez %v4706_v16  ;;  %vm4821_vm0 = vnez %v4712_v10 }
 0x241   :  { %v3066_v1 = vsel %vm4803_vm11, %v3063_v53, %v3065_v55  ;;  %v3073_v7 = vsel %vm4188_vm14, %v3069_v59, 0.0  ;;  %vm4804_vm6 = vmmov %vm4792_vm8  ;;  %v3240_v3 = vpop.permute.xlu0 %3239  ;;  %vm4812_vm14 = vcmp.lt.s32.totalorder %v3846_v20, 111  ;;  %v3567_v20 = vld [vmem:[%s4578_s2 + $0x20] sm:$0xf] }
 0x242   :  { %3561 = vmatprep.subr.msk.mxu0 %vm4804_vm6, %v3071_v61  ;;  %vm4805_vm8 = vmmov %vm4804_vm6  ;;  %v3072_v18 = vsel %vm4808_vm3, %v3066_v1, 0.0 }
 0x243   :  { %3564 = vmatprep.subr.msk.mxu1 %vm4805_vm8, %v3073_v7  ;;  %vm4807_vm15 = vmmov %vm4795_vm4 }
 0x244   :  { %3556 = vmatmul.mubr.msk.f32.vlgmr.msra.gmra.mrb[2].mxu0 %vm4807_vm15, %v3553_v63  ;;  %vm4809_vm4 = vmmov %vm4804_vm6  ;;  %v3242_v37 = vpop.permute.xlu1 %3241 }
 0x245   :  { %3562 = vmatpush1.msk.msra.mxu0 %vm4809_vm4, %v3070_v38  ;;  %vm4810_vm5 = vmmov %vm4798_vm9  ;;  %3155 = vmatprep.mubr.f32.mxu0 %v3685_v5  ;;  %v3246_v30 = vsel %vm4812_vm14, %v3240_v3, %v3242_v37  ;;  %v3244_v9 = vpop.permute.xlu0 %3243 }
 0x246   :  { %3559 = vmatmul.mubr.msk.f32.vlgmr.msra.gmra.mrb[2].mxu1 %vm4810_vm5, %v3553_v63  ;;  %vm4811_vm13 = vmmov %vm4809_vm4  ;;  %v3250_v40 = vsel %vm4814_vm10, %v3246_v30, 0.0 }
 0x247   :  { %3565 = vmatpush1.msk.msra.mxu1 %vm4811_vm13, %v3072_v18  ;;  %3226 = vmatprep.mubr.f32.mxu1 %v3685_v5  ;;  %vm4813_vm9 = vmmov %vm4812_vm14 }
 0x248   :  { %v3247_v11 = vsel %vm4813_vm9, %v3238_v2, %v3240_v3  ;;  %vm4815_vm1 = vmmov %vm4813_vm9 }
 0x249   :  { %v3248_v12 = vsel %vm4815_vm1, %v3244_v9, %v3238_v2  ;;  %vm4816_vm12 = vmmov %vm4815_vm1  ;;  %v3249_v15 = vsel %vm4247_vm2, %v3247_v11, 0.0 }
 0x24a   :  { %v3245_v23 = vsel %vm4816_vm12, %v3242_v37, %v3244_v9  ;;  %v3252_v25 = vsel %vm4817_vm7, %v3248_v12, 0.0  ;;  %vm4818_vm11 = vmmov %vm4809_vm4 }
 0x24b   :  { %3568 = vmatprep.subr.msk.mxu0 %vm4818_vm11, %v3250_v40  ;;  %vm4819_vm6 = vmmov %vm4809_vm4  ;;  %v3251_v27 = vsel %vm4821_vm0, %v3245_v23, 0.0 }
 0x24c   :  { %3571 = vmatprep.subr.msk.mxu1 %vm4819_vm6, %v3252_v25  ;;  %vm4820_vm8 = vmmov %vm4810_vm5 }
 0x24d   :  { %3563 = vmatmul.mubr.msk.f32.vlgmr.msra.gmra.mrb[2].mxu0 %vm4820_vm8, %v3560_v14  ;;  %vm4822_vm15 = vmmov %vm4809_vm4 }
 0x24e   :  { %3569 = vmatpush1.msk.msra.mxu0 %vm4822_vm15, %v3249_v15  ;;  %vm4823_vm3 = vmmov %vm4810_vm5  ;;  %3334 = vmatprep.mubr.f32.mxu0 %v3685_v5 }
 0x24f   :  { %3566 = vmatmul.mubr.msk.f32.vlgmr.msra.gmra.mrb[2].mxu1 %vm4823_vm3, %v3560_v14  ;;  %vm4824_vm2 = vmmov %vm4823_vm3 }
 0x250   :  { %3572 = vmatpush1.msk.msra.mxu1 %vm4809_vm4, %v3251_v27  ;;  %3405 = vmatprep.mubr.f32.mxu1 %v3685_v5  ;;  %vm4825_vm5 = vmmov %vm4824_vm2 }
 0x255   :  { %3570 = vmatmul.mubr.msk.f32.vlgmr.msra.gmra.mrb[2].mxu0 %vm4824_vm2, %v3567_v20  ;;  %v3418_v16 = vpop.permute.xlu1 %3417 }
 0x257   :  { %3573 = vmatmul.mubr.msk.f32.vlgmr.msra.gmra.mrb[2].mxu1 %vm4825_vm5, %v3567_v20 }
 0x328   :  { %v3336_v17 = vpop.f32.mrb[2].mxu0 }
 0x329   :  { %v3420_v10 = vadd.f32 %v3418_v16, %v3336_v17  ;;  %v3338_v22 = vpop.f32.mrb[3].mxu0 }
 0x32a   :  { %v3407_v24 = vpop.f32.mrb[2].mxu1  ;;  %v3421_v41 = vadd.f32 %v3418_v16, %v3338_v22 }
 0x32b   :  { %v3422_v28 = vadd.f32 %v3418_v16, %v3407_v24  ;;  %v3409_v29 = vpop.f32.mrb[3].mxu1 }
 0x32c   :  { %v3423_v35 = vadd.f32 %v3418_v16, %v3409_v29  ;;  %v3428_v6 = vcombine.low %v3420_v10, %v3421_v41 }
 0x32e   :  { %v3429_v5 = vcombine.low %v3422_v28, %v3423_v35  ;;  %v3432_v31 = vadd.f32 %v3657_v36, %v3428_v6 }
 0x330   :  { %v3433_v51 = vadd.f32 %v3658_v52, %v3429_v5  ;;  %3434 = vst [vmem:[#allocation2] sm:$0xff] %v3432_v31 }
 0x332   :  { %3435 = vst [vmem:[#allocation2 + $0x8] sm:$0xff] %v3433_v51 }
 0x333   :  { %3670 = shalt.err (!%p3667_p4)
}
 0x334   :  { %s3671_s6 = scalar_lea.hbm %s4581_s5, 256 }
 0x335   :  { %p3672_p5 = scmp.ne.s32.totalorder %s4581_s5, %s3671_s6  ;;  %p3675_p6 = scmp.lt.u32.totalorder %s3671_s6, %s4581_s5 }
 0x337   :  { %p3677_p7 = pnand %p3675_p6, %p3672_p5 }
 0x339   :  { %3680 = shalt.err (!%p3677_p7)
}
 0x33a   :  { %3445 = dma.vmem_to_hbm [thread:$0]  %s3443_s16, 256, %s4581_s5, [#allocation3]  }
 0x33b   :  { %3681 = dma.done.wait [#allocation3], 256  }
 0x33c   :  { %3682 = vsyncadd [#allocation3], 4294967040 }
 0x33d   :  { %3449 = vsyncpa [#allocation3], 1 }

</bundles_post_ra>
